<compile_context>
chip_gen: v7x
topology: tpu7x:2x2x1
jax: 0.10.0
libtpu: 0.0.40
codegen_flags: <defaults>
</compile_context>

<pallas_src>
import jax
import jax.numpy as jnp
from jax import lax
from jax.experimental import pallas as pl
from jax.experimental.pallas import tpu as pltpu

# ---- small synthetic config (mirrors MoCo(dim, K, m, T, mlp=True)) ----
N = 8           # batch
T_STEPS = 8     # decode steps  (scores.size(1))
D_IMG = 32      # image feature dim fed to the stand-in encoder
V_DIM = 128     # encoder output dim ("dim" / vocab-score width)
H_DIM = 128     # projection hidden dim
C_DIM = 128     # projection_dim (contrastive feature dim)
K_QUEUE = 256   # queue size K
MOMENTUM = 0.999
TEMP = 0.07

LPOS_PAD = 128  # lane-dense pad block that carries l_pos in the logits output


def _fs(shape):
    # whole-array block, single grid point
    return pl.BlockSpec(shape, lambda i: (0,) * len(shape))


# ---------------- single fused Pallas kernel ----------------
# TODO(synk): the real cascade_sg_first_contextGAT_Decoder (GAT + LSTM
# decoder over object/relation features, masks, captions) is undefined in
# the reference; a linear+tanh over per-step image features stands in.
def moco_fused_kernel(ptr_ref, xq_ref, xk_ref, punshuf_ref,
                      wq_enc_ref, bq_enc_ref, wq_p_ref, bq_p_ref,
                      wq_p1_ref, bq_p1_ref,
                      wk_enc_ref, bk_enc_ref, wk_p_ref, bk_p_ref,
                      wk_p1_ref, bk_p1_ref,
                      queue_ref,
                      scores_ref, logits_ref, queue_out_ref,
                      wk_enc_out_ref, bk_enc_out_ref, wk_p_out_ref,
                      bk_p_out_ref, wk_p1_out_ref, bk_p1_out_ref):
    n, t, v = scores_ref.shape
    inv_t = 1.0 / float(t)
    inv_temp = 1.0 / TEMP
    m = MOMENTUM
    one_m = 1.0 - MOMENTUM

    # --- momentum (EMA) update of the key encoder, fused in-kernel ---
    # Updated values are used for the key path below and written back in
    # place (outputs alias the key-param inputs).
    wk_enc = wk_enc_ref[...] * m + wq_enc_ref[...] * one_m
    bk_enc = bk_enc_ref[...] * m + bq_enc_ref[...] * one_m
    wk_p = wk_p_ref[...] * m + wq_p_ref[...] * one_m
    bk_p = bk_p_ref[...] * m + bq_p_ref[...] * one_m
    wk_p1 = wk_p1_ref[...] * m + wq_p1_ref[...] * one_m
    bk_p1 = bk_p1_ref[...] * m + bq_p1_ref[...] * one_m
    wk_enc_out_ref[...] = wk_enc
    bk_enc_out_ref[...] = bk_enc
    wk_p_out_ref[...] = wk_p
    bk_p_out_ref[...] = bk_p
    wk_p1_out_ref[...] = wk_p1
    bk_p1_out_ref[...] = bk_p1

    # --- query path: stand-in encoder -> scores -> temporal mean pool -> MLP ---
    enc_q = jnp.tanh(jnp.dot(xq_ref[...], wq_enc_ref[...],
                             preferred_element_type=jnp.float32) + bq_enc_ref[...])
    scores_ref[...] = enc_q.reshape(n, t, v)
    pooled_q = jnp.sum(enc_q.reshape(n, t, v), axis=1) * inv_t           # (N, V)
    hq = jnp.dot(pooled_q, wq_p_ref[...],
                 preferred_element_type=jnp.float32) + bq_p_ref[...]      # (N, H)
    zq = jnp.dot(hq, wq_p1_ref[...],
                 preferred_element_type=jnp.float32) + bq_p1_ref[...]     # (N, C)
    # L2 normalize (rsqrt -> EUP); eps on sum-of-squares matches F.normalize
    q = zq * lax.rsqrt(jnp.maximum(jnp.sum(zq * zq, axis=1, keepdims=True), 1e-24))

    # --- key path: momentum encoder on the shuffled batch ---
    enc_k = jnp.tanh(jnp.dot(xk_ref[...], wk_enc,
                             preferred_element_type=jnp.float32) + bk_enc)
    pooled_k = jnp.sum(enc_k.reshape(n, t, v), axis=1) * inv_t            # (N, V)
    hk = jnp.dot(pooled_k, wk_p, preferred_element_type=jnp.float32) + bk_p
    zk = jnp.dot(hk, wk_p1, preferred_element_type=jnp.float32) + bk_p1   # (N, C)
    k_shuf = zk * lax.rsqrt(
        jnp.maximum(jnp.sum(zk * zk, axis=1, keepdims=True), 1e-24))

    # --- batch unshuffle of k: one-hot permutation matmul (k = k_shuf[idx_unshuffle]) ---
    k = jnp.dot(punshuf_ref[...], k_shuf, preferred_element_type=jnp.float32)  # (N, C)

    # --- contrastive logits, /T, written straight into the lane-dense output ref ---
    l_pos = jnp.sum(q * k, axis=1, keepdims=True) * inv_temp              # (N, 1)
    l_neg = lax.dot_general(q, queue_ref[...], (((1,), (1,)), ((), ())),
                            preferred_element_type=jnp.float32) * inv_temp  # (N, K)
    logits_ref[:, :LPOS_PAD] = jnp.broadcast_to(l_pos, (n, LPOS_PAD))
    logits_ref[:, LPOS_PAD:] = l_neg

    # --- dequeue & enqueue, in place (queue_out aliases queue input) ---
    # l_neg above used the OLD queue (separate input VMEM block), matching
    # self.queue.clone().detach() before _dequeue_and_enqueue.
    queue_out_ref[...] = queue_ref[...]
    ptr = pl.multiple_of(ptr_ref[0], n)        # K % N == 0 -> ptr is N-aligned
    queue_out_ref[pl.ds(ptr, n), :] = k


def run_moco_fused(queue_ptr, xq, xk, p_unshuf, pq, pk, queue_kc):
    n = p_unshuf.shape[0]
    t = xq.shape[0] // n
    v = pq["w_enc"].shape[1]
    c = queue_kc.shape[1]
    k_sz = queue_kc.shape[0]

    out_shape = (
        jax.ShapeDtypeStruct((n, t, v), jnp.float32),             # scores (query enc)
        jax.ShapeDtypeStruct((n, LPOS_PAD + k_sz), jnp.float32),  # lane-dense logits
        jax.ShapeDtypeStruct((k_sz, c), jnp.float32),             # updated queue (aliased)
        jax.ShapeDtypeStruct(pk["w_enc"].shape, jnp.float32),     # EMA'd key params (aliased)
        jax.ShapeDtypeStruct(pk["b_enc"].shape, jnp.float32),
        jax.ShapeDtypeStruct(pk["w_p"].shape, jnp.float32),
        jax.ShapeDtypeStruct(pk["b_p"].shape, jnp.float32),
        jax.ShapeDtypeStruct(pk["w_p1"].shape, jnp.float32),
        jax.ShapeDtypeStruct(pk["b_p1"].shape, jnp.float32),
    )

    smem_spec = pl.BlockSpec(memory_space=pltpu.MemorySpace.SMEM)
    in_specs = [
        smem_spec,                       # 0: queue_ptr (scalar, SMEM)
        _fs(xq.shape),                   # 1
        _fs(xk.shape),                   # 2
        _fs(p_unshuf.shape),             # 3
        _fs(pq["w_enc"].shape), _fs(pq["b_enc"].shape),   # 4,5
        _fs(pq["w_p"].shape), _fs(pq["b_p"].shape),       # 6,7
        _fs(pq["w_p1"].shape), _fs(pq["b_p1"].shape),     # 8,9
        _fs(pk["w_enc"].shape), _fs(pk["b_enc"].shape),   # 10,11
        _fs(pk["w_p"].shape), _fs(pk["b_p"].shape),       # 12,13
        _fs(pk["w_p1"].shape), _fs(pk["b_p1"].shape),     # 14,15
        _fs(queue_kc.shape),                              # 16
    ]
    out_specs = (
        _fs((n, t, v)),
        _fs((n, LPOS_PAD + k_sz)),
        _fs((k_sz, c)),
        _fs(pk["w_enc"].shape), _fs(pk["b_enc"].shape),
        _fs(pk["w_p"].shape), _fs(pk["b_p"].shape),
        _fs(pk["w_p1"].shape), _fs(pk["b_p1"].shape),
    )

    # TODO(synk): at production K (65536) tile the queue along a K grid axis
    # ((2048-4096, 128) tiles, pl.Buffered(2-3), vmem_limit_bytes set,
    # "parallel" dimension_semantics for v7x's two TCs) and store it in bf16
    # (fp8 on v7x). At K=256 a single whole-array block is the fast path.
    return pl.pallas_call(
        moco_fused_kernel,
        out_shape=out_shape,
        grid=(1,),
        in_specs=in_specs,
        out_specs=out_specs,
        input_output_aliases={16: 2, 10: 3, 11: 4, 12: 5, 13: 6, 14: 7, 15: 8},
    )(queue_ptr, xq, xk, p_unshuf,
      pq["w_enc"], pq["b_enc"], pq["w_p"], pq["b_p"], pq["w_p1"], pq["b_p1"],
      pk["w_enc"], pk["b_enc"], pk["w_p"], pk["b_p"], pk["w_p1"], pk["b_p1"],
      queue_kc)


# ---------------- parameter / buffer init (deterministic, in-script) --------
def init_params(key):
    ks = jax.random.split(key, 4)
    s = 0.02
    q = {
        "w_enc": jax.random.normal(ks[0], (D_IMG, V_DIM), jnp.float32) * s,
        "b_enc": jnp.zeros((1, V_DIM), jnp.float32),
        "w_p":   jax.random.normal(ks[1], (V_DIM, H_DIM), jnp.float32) * s,
        "b_p":   jnp.zeros((1, H_DIM), jnp.float32),
        "w_p1":  jax.random.normal(ks[2], (H_DIM, C_DIM), jnp.float32) * s,
        "b_p1":  jnp.zeros((1, C_DIM), jnp.float32),
    }
    # key encoder starts as an exact copy of the query encoder (as in __init__)
    k = jax.tree_util.tree_map(lambda x: x, q)
    # queue stored [K, C]; each row (key vector) L2-normalized, as in the module
    queue = jax.random.normal(ks[3], (K_QUEUE, C_DIM), jnp.float32)
    queue = queue / jnp.maximum(
        jnp.sqrt(jnp.sum(queue * queue, axis=1, keepdims=True)), 1e-12)
    buffers = {"queue": queue, "queue_ptr": jnp.zeros((1,), jnp.int32)}
    return {"q": q, "k": k}, buffers


# ---------------- MoCo.forward ----------------
def _moco_forward_impl(params, buffers, image_features, encoded_captions,
                       caption_lengths, shuffle_key):
    pq = params["q"]
    pk = params["k"]

    # ---- batch shuffle (single gpu); unshuffle handled in-kernel via one-hot P ----
    idx_shuffle = jax.random.permutation(shuffle_key, N)
    idx_unshuffle = jnp.argsort(idx_shuffle)
    p_unshuf = jax.nn.one_hot(idx_unshuffle, N, dtype=jnp.float32)       # (N, N)

    xq = image_features[0].reshape(N * T_STEPS, D_IMG)
    xk = image_features[1][idx_shuffle].reshape(N * T_STEPS, D_IMG)

    # ---- fused kernel: EMA + both encoders + mean-pool + MLP + normalize
    #      + logits + in-place enqueue ----
    (scores, logits_pad, new_queue,
     wk_enc, bk_enc, wk_p, bk_p, wk_p1, bk_p1) = run_moco_fused(
        buffers["queue_ptr"], xq, xk, p_unshuf, pq, pk, buffers["queue"])

    scores_d = scores                # TODO(synk): real encoder returns distinct scores_d
    caps_sorted = encoded_captions
    decode_lengths = caption_lengths - 1
    sort_ind = jnp.arange(N, dtype=jnp.int32)

    # lane-dense padded logits -> final [l_pos, l_neg] layout (tiny fused slice+concat)
    logits = jnp.concatenate([logits_pad[:, :1], logits_pad[:, LPOS_PAD:]], axis=1)
    labels = jnp.zeros((N,), dtype=jnp.int32)

    new_ptr = ((buffers["queue_ptr"] + N) % K_QUEUE).astype(jnp.int32)
    new_buffers = {"queue": new_queue, "queue_ptr": new_ptr}
    new_params = {"q": pq,
                  "k": {"w_enc": wk_enc, "b_enc": bk_enc,
                        "w_p": wk_p, "b_p": bk_p,
                        "w_p1": wk_p1, "b_p1": bk_p1}}

    return ((logits, labels, scores, scores_d, caps_sorted, decode_lengths,
             sort_ind), new_buffers, new_params)


# single dispatch for the whole step (the toy problem is launch-overhead bound)
moco_forward = jax.jit(_moco_forward_impl)


if __name__ == "__main__":
    assert K_QUEUE % N == 0  # mirrors MoCo's "K % batch_size == 0" requirement

    root = jax.random.PRNGKey(0)
    pkey, dkey, skey = jax.random.split(root, 3)
    params, buffers = init_params(pkey)

    dks = jax.random.split(dkey, 2)
    # TODO(synk): object/relation features, masks and pair ids feed the real
    # GAT decoder; the stand-in encoder only consumes image_features.
    image_features = jax.random.normal(dks[0], (2, N, T_STEPS, D_IMG), jnp.float32)
    encoded_captions = jax.random.randint(dks[1], (N, T_STEPS), 0, V_DIM)
    caption_lengths = jnp.full((N,), T_STEPS, jnp.int32)

    outs, buffers, params = moco_forward(params, buffers, image_features,
                                         encoded_captions, caption_lengths, skey)
    logits, labels, scores, scores_d, caps_sorted, decode_lengths, sort_ind = outs
    jax.block_until_ready((logits, labels, buffers["queue"],
                           params["k"]["w_enc"]))

    assert logits.shape == (N, 1 + K_QUEUE)
    assert labels.shape == (N,)
    assert scores.shape == (N, T_STEPS, V_DIM)
    assert buffers["queue"].shape == (K_QUEUE, C_DIM)
    assert buffers["queue_ptr"].shape == (1,)
    print("KERNEL_OK")
</pallas_src>

<mosaic_0001>
module attributes {stable_mosaic.version = 11 : i64} {
  func.func @moco_fused_kernel(%arg0: i32, %arg1: memref<1xi32, #tpu.memory_space<smem>>, %arg2: memref<64x32xf32, #tpu.memory_space<vmem>>, %arg3: memref<64x32xf32, #tpu.memory_space<vmem>>, %arg4: memref<8x8xf32, #tpu.memory_space<vmem>>, %arg5: memref<32x128xf32, #tpu.memory_space<vmem>>, %arg6: memref<1x128xf32, #tpu.memory_space<vmem>>, %arg7: memref<128x128xf32, #tpu.memory_space<vmem>>, %arg8: memref<1x128xf32, #tpu.memory_space<vmem>>, %arg9: memref<128x128xf32, #tpu.memory_space<vmem>>, %arg10: memref<1x128xf32, #tpu.memory_space<vmem>>, %arg11: memref<32x128xf32, #tpu.memory_space<vmem>>, %arg12: memref<1x128xf32, #tpu.memory_space<vmem>>, %arg13: memref<128x128xf32, #tpu.memory_space<vmem>>, %arg14: memref<1x128xf32, #tpu.memory_space<vmem>>, %arg15: memref<128x128xf32, #tpu.memory_space<vmem>>, %arg16: memref<1x128xf32, #tpu.memory_space<vmem>>, %arg17: memref<256x128xf32, #tpu.memory_space<vmem>>, %arg18: memref<8x8x128xf32, #tpu.memory_space<vmem>>, %arg19: memref<8x384xf32, #tpu.memory_space<vmem>>, %arg20: memref<256x128xf32, #tpu.memory_space<vmem>>, %arg21: memref<32x128xf32, #tpu.memory_space<vmem>>, %arg22: memref<1x128xf32, #tpu.memory_space<vmem>>, %arg23: memref<128x128xf32, #tpu.memory_space<vmem>>, %arg24: memref<1x128xf32, #tpu.memory_space<vmem>>, %arg25: memref<128x128xf32, #tpu.memory_space<vmem>>, %arg26: memref<1x128xf32, #tpu.memory_space<vmem>>) attributes {dimension_semantics = [#tpu.dimension_semantics<arbitrary>], iteration_bounds = array<i64: 1>, scalar_prefetch = 0 : i64, scratch_operands = 0 : i64, tpu.core_type = #tpu.core_type<tc>, window_params = [{transform_indices = @transform_0, window_bounds = array<i64: 1>}, {pipeline_mode = #tpu.pipeline_mode<synchronous>, transform_indices = @transform_1, window_bounds = array<i64: 64, 32>}, {pipeline_mode = #tpu.pipeline_mode<synchronous>, transform_indices = @transform_2, window_bounds = array<i64: 64, 32>}, {pipeline_mode = #tpu.pipeline_mode<synchronous>, transform_indices = @transform_3, window_bounds = array<i64: 8, 8>}, {pipeline_mode = #tpu.pipeline_mode<synchronous>, transform_indices = @transform_4, window_bounds = array<i64: 32, 128>}, {pipeline_mode = #tpu.pipeline_mode<synchronous>, transform_indices = @transform_5, window_bounds = array<i64: 1, 128>}, {pipeline_mode = #tpu.pipeline_mode<synchronous>, transform_indices = @transform_6, window_bounds = array<i64: 128, 128>}, {pipeline_mode = #tpu.pipeline_mode<synchronous>, transform_indices = @transform_7, window_bounds = array<i64: 1, 128>}, {pipeline_mode = #tpu.pipeline_mode<synchronous>, transform_indices = @transform_8, window_bounds = array<i64: 128, 128>}, {pipeline_mode = #tpu.pipeline_mode<synchronous>, transform_indices = @transform_9, window_bounds = array<i64: 1, 128>}, {pipeline_mode = #tpu.pipeline_mode<synchronous>, transform_indices = @transform_10, window_bounds = array<i64: 32, 128>}, {pipeline_mode = #tpu.pipeline_mode<synchronous>, transform_indices = @transform_11, window_bounds = array<i64: 1, 128>}, {pipeline_mode = #tpu.pipeline_mode<synchronous>, transform_indices = @transform_12, window_bounds = array<i64: 128, 128>}, {pipeline_mode = #tpu.pipeline_mode<synchronous>, transform_indices = @transform_13, window_bounds = array<i64: 1, 128>}, {pipeline_mode = #tpu.pipeline_mode<synchronous>, transform_indices = @transform_14, window_bounds = array<i64: 128, 128>}, {pipeline_mode = #tpu.pipeline_mode<synchronous>, transform_indices = @transform_15, window_bounds = array<i64: 1, 128>}, {pipeline_mode = #tpu.pipeline_mode<synchronous>, transform_indices = @transform_16, window_bounds = array<i64: 256, 128>}, {pipeline_mode = #tpu.pipeline_mode<synchronous>, transform_indices = @transform_17, window_bounds = array<i64: 8, 8, 128>}, {pipeline_mode = #tpu.pipeline_mode<synchronous>, transform_indices = @transform_18, window_bounds = array<i64: 8, 384>}, {pipeline_mode = #tpu.pipeline_mode<synchronous>, transform_indices = @transform_19, window_bounds = array<i64: 256, 128>}, {pipeline_mode = #tpu.pipeline_mode<synchronous>, transform_indices = @transform_20, window_bounds = array<i64: 32, 128>}, {pipeline_mode = #tpu.pipeline_mode<synchronous>, transform_indices = @transform_21, window_bounds = array<i64: 1, 128>}, {pipeline_mode = #tpu.pipeline_mode<synchronous>, transform_indices = @transform_22, window_bounds = array<i64: 128, 128>}, {pipeline_mode = #tpu.pipeline_mode<synchronous>, transform_indices = @transform_23, window_bounds = array<i64: 1, 128>}, {pipeline_mode = #tpu.pipeline_mode<synchronous>, transform_indices = @transform_24, window_bounds = array<i64: 128, 128>}, {pipeline_mode = #tpu.pipeline_mode<synchronous>, transform_indices = @transform_25, window_bounds = array<i64: 1, 128>}]} {
    %c0 = arith.constant 0 : index
    %c0_0 = arith.constant 0 : index
    %0 = vector.load %arg11[%c0, %c0_0] : memref<32x128xf32, #tpu.memory_space<vmem>>, vector<32x128xf32>
    %cst = arith.constant 9.990000e-01 : f32
    %1 = vector.broadcast %cst : f32 to vector<32x128xf32>
    %2 = arith.mulf %0, %1 : vector<32x128xf32>
    %c0_1 = arith.constant 0 : index
    %c0_2 = arith.constant 0 : index
    %3 = vector.load %arg5[%c0_1, %c0_2] : memref<32x128xf32, #tpu.memory_space<vmem>>, vector<32x128xf32>
    %cst_3 = arith.constant 1.000000e-03 : f32
    %4 = vector.broadcast %cst_3 : f32 to vector<32x128xf32>
    %5 = arith.mulf %3, %4 : vector<32x128xf32>
    %6 = arith.addf %2, %5 : vector<32x128xf32>
    %c0_4 = arith.constant 0 : index
    %c0_5 = arith.constant 0 : index
    %7 = vector.load %arg12[%c0_4, %c0_5] : memref<1x128xf32, #tpu.memory_space<vmem>>, vector<1x128xf32>
    %cst_6 = arith.constant 9.990000e-01 : f32
    %8 = vector.broadcast %cst_6 : f32 to vector<1x128xf32>
    %9 = arith.mulf %7, %8 : vector<1x128xf32>
    %c0_7 = arith.constant 0 : index
    %c0_8 = arith.constant 0 : index
    %10 = vector.load %arg6[%c0_7, %c0_8] : memref<1x128xf32, #tpu.memory_space<vmem>>, vector<1x128xf32>
    %cst_9 = arith.constant 1.000000e-03 : f32
    %11 = vector.broadcast %cst_9 : f32 to vector<1x128xf32>
    %12 = arith.mulf %10, %11 : vector<1x128xf32>
    %13 = arith.addf %9, %12 : vector<1x128xf32>
    %c0_10 = arith.constant 0 : index
    %c0_11 = arith.constant 0 : index
    %14 = vector.load %arg13[%c0_10, %c0_11] : memref<128x128xf32, #tpu.memory_space<vmem>>, vector<128x128xf32>
    %cst_12 = arith.constant 9.990000e-01 : f32
    %15 = vector.broadcast %cst_12 : f32 to vector<128x128xf32>
    %16 = arith.mulf %14, %15 : vector<128x128xf32>
    %c0_13 = arith.constant 0 : index
    %c0_14 = arith.constant 0 : index
    %17 = vector.load %arg7[%c0_13, %c0_14] : memref<128x128xf32, #tpu.memory_space<vmem>>, vector<128x128xf32>
    %cst_15 = arith.constant 1.000000e-03 : f32
    %18 = vector.broadcast %cst_15 : f32 to vector<128x128xf32>
    %19 = arith.mulf %17, %18 : vector<128x128xf32>
    %20 = arith.addf %16, %19 : vector<128x128xf32>
    %c0_16 = arith.constant 0 : index
    %c0_17 = arith.constant 0 : index
    %21 = vector.load %arg14[%c0_16, %c0_17] : memref<1x128xf32, #tpu.memory_space<vmem>>, vector<1x128xf32>
    %cst_18 = arith.constant 9.990000e-01 : f32
    %22 = vector.broadcast %cst_18 : f32 to vector<1x128xf32>
    %23 = arith.mulf %21, %22 : vector<1x128xf32>
    %c0_19 = arith.constant 0 : index
    %c0_20 = arith.constant 0 : index
    %24 = vector.load %arg8[%c0_19, %c0_20] : memref<1x128xf32, #tpu.memory_space<vmem>>, vector<1x128xf32>
    %cst_21 = arith.constant 1.000000e-03 : f32
    %25 = vector.broadcast %cst_21 : f32 to vector<1x128xf32>
    %26 = arith.mulf %24, %25 : vector<1x128xf32>
    %27 = arith.addf %23, %26 : vector<1x128xf32>
    %c0_22 = arith.constant 0 : index
    %c0_23 = arith.constant 0 : index
    %28 = vector.load %arg15[%c0_22, %c0_23] : memref<128x128xf32, #tpu.memory_space<vmem>>, vector<128x128xf32>
    %cst_24 = arith.constant 9.990000e-01 : f32
    %29 = vector.broadcast %cst_24 : f32 to vector<128x128xf32>
    %30 = arith.mulf %28, %29 : vector<128x128xf32>
    %c0_25 = arith.constant 0 : index
    %c0_26 = arith.constant 0 : index
    %31 = vector.load %arg9[%c0_25, %c0_26] : memref<128x128xf32, #tpu.memory_space<vmem>>, vector<128x128xf32>
    %cst_27 = arith.constant 1.000000e-03 : f32
    %32 = vector.broadcast %cst_27 : f32 to vector<128x128xf32>
    %33 = arith.mulf %31, %32 : vector<128x128xf32>
    %34 = arith.addf %30, %33 : vector<128x128xf32>
    %c0_28 = arith.constant 0 : index
    %c0_29 = arith.constant 0 : index
    %35 = vector.load %arg16[%c0_28, %c0_29] : memref<1x128xf32, #tpu.memory_space<vmem>>, vector<1x128xf32>
    %cst_30 = arith.constant 9.990000e-01 : f32
    %36 = vector.broadcast %cst_30 : f32 to vector<1x128xf32>
    %37 = arith.mulf %35, %36 : vector<1x128xf32>
    %c0_31 = arith.constant 0 : index
    %c0_32 = arith.constant 0 : index
    %38 = vector.load %arg10[%c0_31, %c0_32] : memref<1x128xf32, #tpu.memory_space<vmem>>, vector<1x128xf32>
    %cst_33 = arith.constant 1.000000e-03 : f32
    %39 = vector.broadcast %cst_33 : f32 to vector<1x128xf32>
    %40 = arith.mulf %38, %39 : vector<1x128xf32>
    %41 = arith.addf %37, %40 : vector<1x128xf32>
    %c0_34 = arith.constant 0 : index
    %c0_35 = arith.constant 0 : index
    %42 = vector.load %arg21[%c0_34, %c0_35] : memref<32x128xf32, #tpu.memory_space<vmem>>, vector<32x128xf32>
    tpu.vector_store %arg21[%c0_34, %c0_35], %6 {strides = array<i32>} : memref<32x128xf32, #tpu.memory_space<vmem>>, vector<32x128xf32>,
    %c0_36 = arith.constant 0 : index
    %c0_37 = arith.constant 0 : index
    %43 = vector.load %arg22[%c0_36, %c0_37] : memref<1x128xf32, #tpu.memory_space<vmem>>, vector<1x128xf32>
    tpu.vector_store %arg22[%c0_36, %c0_37], %13 {strides = array<i32>} : memref<1x128xf32, #tpu.memory_space<vmem>>, vector<1x128xf32>,
    %c0_38 = arith.constant 0 : index
    %c0_39 = arith.constant 0 : index
    %44 = vector.load %arg23[%c0_38, %c0_39] : memref<128x128xf32, #tpu.memory_space<vmem>>, vector<128x128xf32>
    tpu.vector_store %arg23[%c0_38, %c0_39], %20 {strides = array<i32>} : memref<128x128xf32, #tpu.memory_space<vmem>>, vector<128x128xf32>,
    %c0_40 = arith.constant 0 : index
    %c0_41 = arith.constant 0 : index
    %45 = vector.load %arg24[%c0_40, %c0_41] : memref<1x128xf32, #tpu.memory_space<vmem>>, vector<1x128xf32>
    tpu.vector_store %arg24[%c0_40, %c0_41], %27 {strides = array<i32>} : memref<1x128xf32, #tpu.memory_space<vmem>>, vector<1x128xf32>,
    %c0_42 = arith.constant 0 : index
    %c0_43 = arith.constant 0 : index
    %46 = vector.load %arg25[%c0_42, %c0_43] : memref<128x128xf32, #tpu.memory_space<vmem>>, vector<128x128xf32>
    tpu.vector_store %arg25[%c0_42, %c0_43], %34 {strides = array<i32>} : memref<128x128xf32, #tpu.memory_space<vmem>>, vector<128x128xf32>,
    %c0_44 = arith.constant 0 : index
    %c0_45 = arith.constant 0 : index
    %47 = vector.load %arg26[%c0_44, %c0_45] : memref<1x128xf32, #tpu.memory_space<vmem>>, vector<1x128xf32>
    tpu.vector_store %arg26[%c0_44, %c0_45], %41 {strides = array<i32>} : memref<1x128xf32, #tpu.memory_space<vmem>>, vector<1x128xf32>,
    %c0_46 = arith.constant 0 : index
    %c0_47 = arith.constant 0 : index
    %48 = vector.load %arg2[%c0_46, %c0_47] : memref<64x32xf32, #tpu.memory_space<vmem>>, vector<64x32xf32>
    %c0_48 = arith.constant 0 : index
    %c0_49 = arith.constant 0 : index
    %49 = vector.load %arg5[%c0_48, %c0_49] : memref<32x128xf32, #tpu.memory_space<vmem>>, vector<32x128xf32>
    %cst_50 = arith.constant dense<0.000000e+00> : vector<64x128xf32>
    %50 = tpu.matmul %48, %49, %cst_50 {dimension_numbers = #tpu.dot_dimension_numbers<[1], [0], [0], [1], [0, 0, 1, 1], [], []>} : vector<64x32xf32>, vector<32x128xf32>, vector<64x128xf32> -> vector<64x128xf32>
    %c0_51 = arith.constant 0 : index
    %c0_52 = arith.constant 0 : index
    %51 = vector.load %arg6[%c0_51, %c0_52] : memref<1x128xf32, #tpu.memory_space<vmem>>, vector<1x128xf32>
    %52 = vector.broadcast %51 : vector<1x128xf32> to vector<64x128xf32>
    %53 = arith.addf %50, %52 : vector<64x128xf32>
    %54 = math.tanh %53 : vector<64x128xf32>
    %55 = vector.shape_cast %54 : vector<64x128xf32> to vector<8x8x128xf32>
    %c0_53 = arith.constant 0 : index
    %c0_54 = arith.constant 0 : index
    %c0_55 = arith.constant 0 : index
    %56 = vector.load %arg18[%c0_53, %c0_54, %c0_55] : memref<8x8x128xf32, #tpu.memory_space<vmem>>, vector<8x8x128xf32>
    tpu.vector_store %arg18[%c0_53, %c0_54, %c0_55], %55 {strides = array<i32>} : memref<8x8x128xf32, #tpu.memory_space<vmem>>, vector<8x8x128xf32>,
    %57 = vector.shape_cast %54 : vector<64x128xf32> to vector<8x8x128xf32>
    %cst_56 = arith.constant dense<0.000000e+00> : vector<8x128xf32>
    %58 = vector.multi_reduction <add>, %57, %cst_56 [1] : vector<8x8x128xf32> to vector<8x128xf32>
    %cst_57 = arith.constant 1.250000e-01 : f32
    %59 = vector.broadcast %cst_57 : f32 to vector<8x128xf32>
    %60 = arith.mulf %58, %59 : vector<8x128xf32>
    %c0_58 = arith.constant 0 : index
    %c0_59 = arith.constant 0 : index
    %61 = vector.load %arg7[%c0_58, %c0_59] : memref<128x128xf32, #tpu.memory_space<vmem>>, vector<128x128xf32>
    %cst_60 = arith.constant dense<0.000000e+00> : vector<8x128xf32>
    %62 = tpu.matmul %60, %61, %cst_60 {dimension_numbers = #tpu.dot_dimension_numbers<[1], [0], [0], [1], [0, 0, 1, 1], [], []>} : vector<8x128xf32>, vector<128x128xf32>, vector<8x128xf32> -> vector<8x128xf32>
    %c0_61 = arith.constant 0 : index
    %c0_62 = arith.constant 0 : index
    %63 = vector.load %arg8[%c0_61, %c0_62] : memref<1x128xf32, #tpu.memory_space<vmem>>, vector<1x128xf32>
    %64 = vector.broadcast %63 : vector<1x128xf32> to vector<8x128xf32>
    %65 = arith.addf %62, %64 : vector<8x128xf32>
    %c0_63 = arith.constant 0 : index
    %c0_64 = arith.constant 0 : index
    %66 = vector.load %arg9[%c0_63, %c0_64] : memref<128x128xf32, #tpu.memory_space<vmem>>, vector<128x128xf32>
    %cst_65 = arith.constant dense<0.000000e+00> : vector<8x128xf32>
    %67 = tpu.matmul %65, %66, %cst_65 {dimension_numbers = #tpu.dot_dimension_numbers<[1], [0], [0], [1], [0, 0, 1, 1], [], []>} : vector<8x128xf32>, vector<128x128xf32>, vector<8x128xf32> -> vector<8x128xf32>
    %c0_66 = arith.constant 0 : index
    %c0_67 = arith.constant 0 : index
    %68 = vector.load %arg10[%c0_66, %c0_67] : memref<1x128xf32, #tpu.memory_space<vmem>>, vector<1x128xf32>
    %69 = vector.broadcast %68 : vector<1x128xf32> to vector<8x128xf32>
    %70 = arith.addf %67, %69 : vector<8x128xf32>
    %71 = arith.mulf %70, %70 : vector<8x128xf32>
    %cst_68 = arith.constant dense<0.000000e+00> : vector<8xf32>
    %72 = vector.multi_reduction <add>, %71, %cst_68 [1] : vector<8x128xf32> to vector<8xf32>
    %73 = vector.shape_cast %72 : vector<8xf32> to vector<8x1xf32>
    %cst_69 = arith.constant 1.000000e-24 : f32
    %74 = vector.broadcast %cst_69 : f32 to vector<8x1xf32>
    %75 = arith.maximumf %73, %74 : vector<8x1xf32>
    %76 = math.rsqrt %75 : vector<8x1xf32>
    %77 = vector.broadcast %76 : vector<8x1xf32> to vector<8x128xf32>
    %78 = arith.mulf %70, %77 : vector<8x128xf32>
    %c0_70 = arith.constant 0 : index
    %c0_71 = arith.constant 0 : index
    %79 = vector.load %arg3[%c0_70, %c0_71] : memref<64x32xf32, #tpu.memory_space<vmem>>, vector<64x32xf32>
    %cst_72 = arith.constant dense<0.000000e+00> : vector<64x128xf32>
    %80 = tpu.matmul %79, %6, %cst_72 {dimension_numbers = #tpu.dot_dimension_numbers<[1], [0], [0], [1], [0, 0, 1, 1], [], []>} : vector<64x32xf32>, vector<32x128xf32>, vector<64x128xf32> -> vector<64x128xf32>
    %81 = vector.broadcast %13 : vector<1x128xf32> to vector<64x128xf32>
    %82 = arith.addf %80, %81 : vector<64x128xf32>
    %83 = math.tanh %82 : vector<64x128xf32>
    %84 = vector.shape_cast %83 : vector<64x128xf32> to vector<8x8x128xf32>
    %cst_73 = arith.constant dense<0.000000e+00> : vector<8x128xf32>
    %85 = vector.multi_reduction <add>, %84, %cst_73 [1] : vector<8x8x128xf32> to vector<8x128xf32>
    %cst_74 = arith.constant 1.250000e-01 : f32
    %86 = vector.broadcast %cst_74 : f32 to vector<8x128xf32>
    %87 = arith.mulf %85, %86 : vector<8x128xf32>
    %cst_75 = arith.constant dense<0.000000e+00> : vector<8x128xf32>
    %88 = tpu.matmul %87, %20, %cst_75 {dimension_numbers = #tpu.dot_dimension_numbers<[1], [0], [0], [1], [0, 0, 1, 1], [], []>} : vector<8x128xf32>, vector<128x128xf32>, vector<8x128xf32> -> vector<8x128xf32>
    %89 = vector.broadcast %27 : vector<1x128xf32> to vector<8x128xf32>
    %90 = arith.addf %88, %89 : vector<8x128xf32>
    %cst_76 = arith.constant dense<0.000000e+00> : vector<8x128xf32>
    %91 = tpu.matmul %90, %34, %cst_76 {dimension_numbers = #tpu.dot_dimension_numbers<[1], [0], [0], [1], [0, 0, 1, 1], [], []>} : vector<8x128xf32>, vector<128x128xf32>, vector<8x128xf32> -> vector<8x128xf32>
    %92 = vector.broadcast %41 : vector<1x128xf32> to vector<8x128xf32>
    %93 = arith.addf %91, %92 : vector<8x128xf32>
    %94 = arith.mulf %93, %93 : vector<8x128xf32>
    %cst_77 = arith.constant dense<0.000000e+00> : vector<8xf32>
    %95 = vector.multi_reduction <add>, %94, %cst_77 [1] : vector<8x128xf32> to vector<8xf32>
    %96 = vector.shape_cast %95 : vector<8xf32> to vector<8x1xf32>
    %cst_78 = arith.constant 1.000000e-24 : f32
    %97 = vector.broadcast %cst_78 : f32 to vector<8x1xf32>
    %98 = arith.maximumf %96, %97 : vector<8x1xf32>
    %99 = math.rsqrt %98 : vector<8x1xf32>
    %100 = vector.broadcast %99 : vector<8x1xf32> to vector<8x128xf32>
    %101 = arith.mulf %93, %100 : vector<8x128xf32>
    %c0_79 = arith.constant 0 : index
    %c0_80 = arith.constant 0 : index
    %102 = vector.load %arg4[%c0_79, %c0_80] : memref<8x8xf32, #tpu.memory_space<vmem>>, vector<8x8xf32>
    %cst_81 = arith.constant dense<0.000000e+00> : vector<8x128xf32>
    %103 = tpu.matmul %102, %101, %cst_81 {dimension_numbers = #tpu.dot_dimension_numbers<[1], [0], [0], [1], [0, 0, 1, 1], [], []>} : vector<8x8xf32>, vector<8x128xf32>, vector<8x128xf32> -> vector<8x128xf32>
    %104 = arith.mulf %78, %103 : vector<8x128xf32>
    %cst_82 = arith.constant dense<0.000000e+00> : vector<8xf32>
    %105 = vector.multi_reduction <add>, %104, %cst_82 [1] : vector<8x128xf32> to vector<8xf32>
    %106 = vector.shape_cast %105 : vector<8xf32> to vector<8x1xf32>
    %cst_83 = arith.constant 14.2857141 : f32
    %107 = vector.broadcast %cst_83 : f32 to vector<8x1xf32>
    %108 = arith.mulf %106, %107 : vector<8x1xf32>
    %c0_84 = arith.constant 0 : index
    %c0_85 = arith.constant 0 : index
    %109 = vector.load %arg17[%c0_84, %c0_85] : memref<256x128xf32, #tpu.memory_space<vmem>>, vector<256x128xf32>
    %cst_86 = arith.constant dense<0.000000e+00> : vector<8x256xf32>
    %110 = tpu.matmul %78, %109, %cst_86 {dimension_numbers = #tpu.dot_dimension_numbers<[1], [1], [0], [0], [0, 0, 1, 0], [], []>} : vector<8x128xf32>, vector<256x128xf32>, vector<8x256xf32> -> vector<8x256xf32>
    %cst_87 = arith.constant 14.2857141 : f32
    %111 = vector.broadcast %cst_87 : f32 to vector<8x256xf32>
    %112 = arith.mulf %110, %111 : vector<8x256xf32>
    %113 = vector.shape_cast %108 : vector<8x1xf32> to vector<8x1xf32>
    %114 = vector.broadcast %113 : vector<8x1xf32> to vector<8x128xf32>
    %c0_88 = arith.constant 0 : index
    %c0_89 = arith.constant 0 : index
    %115 = vector.load %arg19[%c0_88, %c0_89] : memref<8x384xf32, #tpu.memory_space<vmem>>, vector<8x128xf32>
    tpu.vector_store %arg19[%c0_88, %c0_89], %114 {strides = array<i32>} : memref<8x384xf32, #tpu.memory_space<vmem>>, vector<8x128xf32>,
    %c0_90 = arith.constant 0 : index
    %c128 = arith.constant 128 : index
    %116 = vector.load %arg19[%c0_90, %c128] : memref<8x384xf32, #tpu.memory_space<vmem>>, vector<8x256xf32>
    tpu.vector_store %arg19[%c0_90, %c128], %112 {strides = array<i32>} : memref<8x384xf32, #tpu.memory_space<vmem>>, vector<8x256xf32>,
    %c0_91 = arith.constant 0 : index
    %c0_92 = arith.constant 0 : index
    %117 = vector.load %arg17[%c0_91, %c0_92] : memref<256x128xf32, #tpu.memory_space<vmem>>, vector<256x128xf32>
    %c0_93 = arith.constant 0 : index
    %c0_94 = arith.constant 0 : index
    %118 = vector.load %arg20[%c0_93, %c0_94] : memref<256x128xf32, #tpu.memory_space<vmem>>, vector<256x128xf32>
    tpu.vector_store %arg20[%c0_93, %c0_94], %117 {strides = array<i32>} : memref<256x128xf32, #tpu.memory_space<vmem>>, vector<256x128xf32>,
    %c0_95 = arith.constant 0 : index
    %119 = memref.load %arg1[%c0_95] : memref<1xi32, #tpu.memory_space<smem>>
    %120 = tpu.assume_multiple %119, 8 : i32
    %121 = arith.index_cast %120 : i32 to index
    %c0_96 = arith.constant 0 : index
    %122 = vector.load %arg20[%121, %c0_96] : memref<256x128xf32, #tpu.memory_space<vmem>>, vector<8x128xf32>
    tpu.vector_store %arg20[%121, %c0_96], %103 {strides = array<i32>} : memref<256x128xf32, #tpu.memory_space<vmem>>, vector<8x128xf32>,
    return
  }
  func.func @transform_0(%arg0: i32) -> i32 {
    %c0_i32 = arith.constant 0 : i32
    %c0_i32_0 = arith.constant 0 : i32
    return %c0_i32 : i32
  }
  func.func @transform_1(%arg0: i32) -> (i32, i32) {
    %c0_i32 = arith.constant 0 : i32
    %c0_i32_0 = arith.constant 0 : i32
    %c0_i32_1 = arith.constant 0 : i32
    return %c0_i32, %c0_i32_0 : i32, i32
  }
  func.func @transform_2(%arg0: i32) -> (i32, i32) {
    %c0_i32 = arith.constant 0 : i32
    %c0_i32_0 = arith.constant 0 : i32
    %c0_i32_1 = arith.constant 0 : i32
    return %c0_i32, %c0_i32_0 : i32, i32
  }
  func.func @transform_3(%arg0: i32) -> (i32, i32) {
    %c0_i32 = arith.constant 0 : i32
    %c0_i32_0 = arith.constant 0 : i32
    %c0_i32_1 = arith.constant 0 : i32
    return %c0_i32, %c0_i32_0 : i32, i32
  }
  func.func @transform_4(%arg0: i32) -> (i32, i32) {
    %c0_i32 = arith.constant 0 : i32
    %c0_i32_0 = arith.constant 0 : i32
    %c0_i32_1 = arith.constant 0 : i32
    return %c0_i32, %c0_i32_0 : i32, i32
  }
  func.func @transform_5(%arg0: i32) -> (i32, i32) {
    %c0_i32 = arith.constant 0 : i32
    %c0_i32_0 = arith.constant 0 : i32
    %c0_i32_1 = arith.constant 0 : i32
    return %c0_i32, %c0_i32_0 : i32, i32
  }
  func.func @transform_6(%arg0: i32) -> (i32, i32) {
    %c0_i32 = arith.constant 0 : i32
    %c0_i32_0 = arith.constant 0 : i32
    %c0_i32_1 = arith.constant 0 : i32
    return %c0_i32, %c0_i32_0 : i32, i32
  }
  func.func @transform_7(%arg0: i32) -> (i32, i32) {
    %c0_i32 = arith.constant 0 : i32
    %c0_i32_0 = arith.constant 0 : i32
    %c0_i32_1 = arith.constant 0 : i32
    return %c0_i32, %c0_i32_0 : i32, i32
  }
  func.func @transform_8(%arg0: i32) -> (i32, i32) {
    %c0_i32 = arith.constant 0 : i32
    %c0_i32_0 = arith.constant 0 : i32
    %c0_i32_1 = arith.constant 0 : i32
    return %c0_i32, %c0_i32_0 : i32, i32
  }
  func.func @transform_9(%arg0: i32) -> (i32, i32) {
    %c0_i32 = arith.constant 0 : i32
    %c0_i32_0 = arith.constant 0 : i32
    %c0_i32_1 = arith.constant 0 : i32
    return %c0_i32, %c0_i32_0 : i32, i32
  }
  func.func @transform_10(%arg0: i32) -> (i32, i32) {
    %c0_i32 = arith.constant 0 : i32
    %c0_i32_0 = arith.constant 0 : i32
    %c0_i32_1 = arith.constant 0 : i32
    return %c0_i32, %c0_i32_0 : i32, i32
  }
  func.func @transform_11(%arg0: i32) -> (i32, i32) {
    %c0_i32 = arith.constant 0 : i32
    %c0_i32_0 = arith.constant 0 : i32
    %c0_i32_1 = arith.constant 0 : i32
    return %c0_i32, %c0_i32_0 : i32, i32
  }
  func.func @transform_12(%arg0: i32) -> (i32, i32) {
    %c0_i32 = arith.constant 0 : i32
    %c0_i32_0 = arith.constant 0 : i32
    %c0_i32_1 = arith.constant 0 : i32
    return %c0_i32, %c0_i32_0 : i32, i32
  }
  func.func @transform_13(%arg0: i32) -> (i32, i32) {
    %c0_i32 = arith.constant 0 : i32
    %c0_i32_0 = arith.constant 0 : i32
    %c0_i32_1 = arith.constant 0 : i32
    return %c0_i32, %c0_i32_0 : i32, i32
  }
  func.func @transform_14(%arg0: i32) -> (i32, i32) {
    %c0_i32 = arith.constant 0 : i32
    %c0_i32_0 = arith.constant 0 : i32
    %c0_i32_1 = arith.constant 0 : i32
    return %c0_i32, %c0_i32_0 : i32, i32
  }
  func.func @transform_15(%arg0: i32) -> (i32, i32) {
    %c0_i32 = arith.constant 0 : i32
    %c0_i32_0 = arith.constant 0 : i32
    %c0_i32_1 = arith.constant 0 : i32
    return %c0_i32, %c0_i32_0 : i32, i32
  }
  func.func @transform_16(%arg0: i32) -> (i32, i32) {
    %c0_i32 = arith.constant 0 : i32
    %c0_i32_0 = arith.constant 0 : i32
    %c0_i32_1 = arith.constant 0 : i32
    return %c0_i32, %c0_i32_0 : i32, i32
  }
  func.func @transform_17(%arg0: i32) -> (i32, i32, i32) {
    %c0_i32 = arith.constant 0 : i32
    %c0_i32_0 = arith.constant 0 : i32
    %c0_i32_1 = arith.constant 0 : i32
    %c0_i32_2 = arith.constant 0 : i32
    return %c0_i32, %c0_i32_0, %c0_i32_1 : i32, i32, i32
  }
  func.func @transform_18(%arg0: i32) -> (i32, i32) {
    %c0_i32 = arith.constant 0 : i32
    %c0_i32_0 = arith.constant 0 : i32
    %c0_i32_1 = arith.constant 0 : i32
    return %c0_i32, %c0_i32_0 : i32, i32
  }
  func.func @transform_19(%arg0: i32) -> (i32, i32) {
    %c0_i32 = arith.constant 0 : i32
    %c0_i32_0 = arith.constant 0 : i32
    %c0_i32_1 = arith.constant 0 : i32
    return %c0_i32, %c0_i32_0 : i32, i32
  }
  func.func @transform_20(%arg0: i32) -> (i32, i32) {
    %c0_i32 = arith.constant 0 : i32
    %c0_i32_0 = arith.constant 0 : i32
    %c0_i32_1 = arith.constant 0 : i32
    return %c0_i32, %c0_i32_0 : i32, i32
  }
  func.func @transform_21(%arg0: i32) -> (i32, i32) {
    %c0_i32 = arith.constant 0 : i32
    %c0_i32_0 = arith.constant 0 : i32
    %c0_i32_1 = arith.constant 0 : i32
    return %c0_i32, %c0_i32_0 : i32, i32
  }
  func.func @transform_22(%arg0: i32) -> (i32, i32) {
    %c0_i32 = arith.constant 0 : i32
    %c0_i32_0 = arith.constant 0 : i32
    %c0_i32_1 = arith.constant 0 : i32
    return %c0_i32, %c0_i32_0 : i32, i32
  }
  func.func @transform_23(%arg0: i32) -> (i32, i32) {
    %c0_i32 = arith.constant 0 : i32
    %c0_i32_0 = arith.constant 0 : i32
    %c0_i32_1 = arith.constant 0 : i32
    return %c0_i32, %c0_i32_0 : i32, i32
  }
  func.func @transform_24(%arg0: i32) -> (i32, i32) {
    %c0_i32 = arith.constant 0 : i32
    %c0_i32_0 = arith.constant 0 : i32
    %c0_i32_1 = arith.constant 0 : i32
    return %c0_i32, %c0_i32_0 : i32, i32
  }
  func.func @transform_25(%arg0: i32) -> (i32, i32) {
    %c0_i32 = arith.constant 0 : i32
    %c0_i32_0 = arith.constant 0 : i32
    %c0_i32_1 = arith.constant 0 : i32
    return %c0_i32, %c0_i32_0 : i32, i32
  }
}

</mosaic_0001>

<bundles_post_ra>
// kernel: _moco_forward_impl.1
= control target key start
LH: loop header
LB: loop body
LE: loop exit
PB: predicated region body
PF: predicated region fallthrough
CT: control target
= control target key end

     0   :  { %vm319_vm0 = vcmask 261120   ;;  %v3007_v34 = vmov 0.0|0.0   ;;  %vm1925_vm1 = vmmov 0   ;;  %v3009_v62 = vmov 0.0   ;;  %s2973_s4 = inlined_call_operand.vmem [shape: f32[32,128], index: 4, kind: input, shape index: {}]   ;;  %s2974_s1 = inlined_call_operand.vmem [shape: f32[64,32], index: 1, kind: input, shape index: {}]   ;;  %s2975_s11 = inlined_call_operand.vmem [shape: f32[1,128], index: 11, kind: input, shape index: {}, may-alias: {11,21}]   ;;  %s2976_s5 = inlined_call_operand.vmem [shape: f32[1,128], index: 5, kind: input, shape index: {}]   ;;  %s2977_s21 = inlined_call_operand.vmem [shape: f32[1,128], index: 21, kind: output, shape index: {4}, may-alias: {11,21}]   ;;  %s2978_s10 = inlined_call_operand.vmem [shape: f32[32,128], index: 10, kind: input, shape index: {}, may-alias: {10,20}]   ;;  %s2979_s6 = inlined_call_operand.vmem [shape: f32[128,128], index: 6, kind: input, shape index: {}]   ;;  %s2980_s2 = inlined_call_operand.vmem [shape: f32[64,32], index: 2, kind: input, shape index: {}]   ;;  %s2981_s20 = inlined_call_operand.vmem [shape: f32[32,128], index: 20, kind: output, shape index: {3}, may-alias: {10,20}]   ;;  %s2982_s17 = inlined_call_operand.vmem [shape: f32[8,8,128], index: 17, kind: output, shape index: {0}]   ;;  %s2983_s8 = inlined_call_operand.vmem [shape: f32[128,128], index: 8, kind: input, shape index: {}]   ;;  %s2984_s12 = inlined_call_operand.vmem [shape: f32[128,128], index: 12, kind: input, shape index: {}, may-alias: {12,22}]   ;;  %s2985_s22 = inlined_call_operand.vmem [shape: f32[128,128], index: 22, kind: output, shape index: {5}, may-alias: {12,22}]   ;;  %s2986_s7 = inlined_call_operand.vmem [shape: f32[1,128], index: 7, kind: input, shape index: {}]   ;;  %s2987_s14 = inlined_call_operand.vmem [shape: f32[128,128], index: 14, kind: input, shape index: {}, may-alias: {14,24}]   ;;  %s2988_s24 = inlined_call_operand.vmem [shape: f32[128,128], index: 24, kind: output, shape index: {7}, may-alias: {14,24}]   ;;  %s2989_s13 = inlined_call_operand.vmem [shape: f32[1,128], index: 13, kind: input, shape index: {}, may-alias: {13,23}]   ;;  %s2990_s23 = inlined_call_operand.vmem [shape: f32[1,128], index: 23, kind: output, shape index: {6}, may-alias: {13,23}]   ;;  %s2991_s9 = inlined_call_operand.vmem [shape: f32[1,128], index: 9, kind: input, shape index: {}]   ;;  %s2992_s15 = inlined_call_operand.vmem [shape: f32[1,128], index: 15, kind: input, shape index: {}, may-alias: {15,25}]   ;;  %s2993_s25 = inlined_call_operand.vmem [shape: f32[1,128], index: 25, kind: output, shape index: {8}, may-alias: {15,25}]   ;;  %s2994_s16 = inlined_call_operand.vmem [shape: f32[256,128], index: 16, kind: input, shape index: {}, may-alias: {16,19}]   ;;  %s2995_s19 = inlined_call_operand.vmem [shape: f32[256,128], index: 19, kind: output, shape index: {2}, may-alias: {16,19}]   ;;  %s2996_s3 = inlined_call_operand.vmem [shape: f32[8,8], index: 3, kind: input, shape index: {}]   ;;  %s2997_s0 = inlined_call_operand.<no memory space> [shape: s32[1], index: 0, kind: input, shape index: {}]   ;;  %s2998_s18 = inlined_call_operand.vmem [shape: f32[8,384], index: 18, kind: output, shape index: {1}]  }
   0x1   :  { %3013 = sst [smem:[#allocation4_spill]] %s2973_s4  ;;  %vm552_vm2 = vcmask 1041409   ;;  %vm554_vm3 = vcmask 1042434   ;;  %vm556_vm4 = vcmask 1043459   ;;  %vm558_vm5 = vcmask 1044484  }
   0x2   :  { %3014 = sst [smem:[#allocation5_spill]] %s2974_s1  ;;  %vm560_vm6 = vcmask 1045509   ;;  %vm562_vm7 = vcmask 1046534   ;;  %vm564_vm8 = vcmask 1047559   ;;  %vm1118_vm9 = vcmask 64512  }
   0x3   :  { %3015 = sst [smem:[#allocation6_spill]] %s2975_s11  ;;  %s3023_s11 = sld [smem:[#allocation4_spill]] }
   0x4   :  { %3016 = sst [smem:[#allocation7_spill]] %s2976_s5  ;;  %s3025_s4 = sld [smem:[#allocation6_spill]] }
   0x5   :  { %3017 = sst [smem:[#allocation8_spill]] %s2977_s21  ;;  %s3024_s21 = sld [smem:[#allocation5_spill]] }
   0x6   :  { %3018 = sst [smem:[#allocation9_spill]] %s2978_s10  ;;  %s3026_s30 = sld [smem:[#allocation7_spill]] }
   0x7   :  { %3019 = sst [smem:[#allocation10_spill]] %s2979_s6  ;;  %s3027_s27 = sld [smem:[#allocation8_spill]] }
   0x8   :  { %3020 = sst [smem:[#allocation11_spill]] %s2980_s2  ;;  %s3029_s6 = sld [smem:[#allocation10_spill]] }
   0x9   :  { %3021 = sst [smem:[#allocation12_spill]] %s2981_s20  ;;  %v308_v0 = vld [vmem:[%s3023_s11] sm:$0xff]  ;;  %v309_v1 = vld [vmem:[%s3023_s11 + $0x8] sm:$0xff]  ;;  %v310_v2 = vld [vmem:[%s3023_s11 + $0x10] sm:$0xff]  ;;  %s3030_s2 = sld [smem:[#allocation11_spill]] }
   0xa   :  { %3022 = sst [smem:[#allocation13_spill]] %s2982_s17  ;;  %v1741_v3 = vpack.c.bf16 %v309_v1, %v308_v0  ;;  %v311_v4 = vld [vmem:[%s3023_s11 + $0x18] sm:$0xff]  ;;  %v86_v7 = vld [vmem:[%s3025_s4] sm:$0x1]  ;;  %v78_v23 = vmul.f32 0.001, %v308_v0 }
   0xb   :  { %v300_v5 = vld [vmem:[%s3024_s21] sm:$0xff]  ;;  %v1745_v6 = vpack.c.bf16 %v311_v4, %v310_v2  ;;  %v87_v9 = vmul.f32 0.999, %v86_v7  ;;  %v301_v12 = vld [vmem:[%s3024_s21 + $0x8] sm:$0xff]  ;;  %v302_v13 = vld [vmem:[%s3024_s21 + $0x10] sm:$0xff]  ;;  %s3031_s28 = sld [smem:[#allocation12_spill]] }
   0xc   :  { %1564 = vmatprep.mubr.msk.f32.mxu0 %vm319_vm0, %v300_v5  ;;  %1742 = vmatprep.subr.bf16.mxu0 %v1741_v3  ;;  %v88_v8 = vld [vmem:[%s3026_s30] sm:$0x1]  ;;  %v303_v14 = vld [vmem:[%s3024_s21 + $0x18] sm:$0xff]  ;;  %v305_v16 = vld [vmem:[%s3024_s21 + $0x28] sm:$0xff]  ;;  %v79_v24 = vmul.f32 0.001, %v309_v1 }
   0xd   :  { %1744 = vmatpush3.bf16.msra.mxu0 %v1741_v3  ;;  %v89_v10 = vmul.f32 0.001, %v88_v8  ;;  %v304_v15 = vld [vmem:[%s3024_s21 + $0x20] sm:$0xff]  ;;  %v306_v17 = vld [vmem:[%s3024_s21 + $0x30] sm:$0xff]  ;;  %v307_v18 = vld [vmem:[%s3024_s21 + $0x38] sm:$0xff]  ;;  %s3032_s21 = sld [smem:[#allocation13_spill]] }
   0xe   :  { %1746 = vmatprep.subr.bf16.mxu0 %v1745_v6  ;;  %v2122_v26 = vld [vmem:[%s3029_s6] sm:$0xff]  ;;  %v2127_v27 = vld [vmem:[%s3029_s6 + $0x8] sm:$0xff]  ;;  %v80_v33 = vmul.f32 0.001, %v310_v2  ;;  %v81_v37 = vmul.f32 0.001, %v311_v4 }
   0xf   :  { %v2079_v11 = vadd.f32 %v89_v10, %v87_v9  ;;  %v1750_v30 = vpack.c.bf16 %v2127_v27, %v2122_v26  ;;  %v2142_v39 = vld [vmem:[%s3029_s6 + $0x10] sm:$0xff]  ;;  %v2147_v40 = vld [vmem:[%s3029_s6 + $0x18] sm:$0xff]  ;;  %v2155_v44 = vld [vmem:[%s3029_s6 + $0x20] sm:$0xff] }
  0x10   :  { %v1753_v42 = vpack.c.bf16 %v2147_v40, %v2142_v39  ;;  %v2160_v45 = vld [vmem:[%s3029_s6 + $0x28] sm:$0xff]  ;;  %v736_v46 = vld [vmem:[%s3030_s2] sm:$0xff]  ;;  %v2177_v49 = vld [vmem:[%s3029_s6 + $0x30] sm:$0xff] }
  0x11   :  { %1748 = vmatpush3.bf16.msra.mxu0 %v1745_v6  ;;  %265 = vst [vmem:[%s3027_s27] sm:$0x1] %v2079_v11  ;;  %s3028_s27 = sld [smem:[#allocation9_spill]]  ;;  %v1756_v47 = vpack.c.bf16 %v2160_v45, %v2155_v44  ;;  %1654 = vmatprep.mubr.msk.f32.mxu1 %vm319_vm0, %v736_v46  ;;  %v737_v48 = vld [vmem:[%s3030_s2 + $0x8] sm:$0xff]  ;;  %v2182_v50 = vld [vmem:[%s3029_s6 + $0x38] sm:$0xff]  ;;  %v738_v51 = vld [vmem:[%s3030_s2 + $0x10] sm:$0xff] }
  0x12   :  { %1749 = vmatprep.subr.bf16.mxu0 %v3007_v34  ;;  %v1759_v52 = vpack.c.bf16 %v2182_v50, %v2177_v49  ;;  %v739_v53 = vld [vmem:[%s3030_s2 + $0x18] sm:$0xff]  ;;  %v2198_v54 = vld [vmem:[%s3029_s6 + $0x40] sm:$0xff]  ;;  %v2203_v55 = vld [vmem:[%s3029_s6 + $0x48] sm:$0xff] }
  0x13   :  { %v740_v56 = vld [vmem:[%s3030_s2 + $0x20] sm:$0xff]  ;;  %v1762_v57 = vpack.c.bf16 %v2203_v55, %v2198_v54  ;;  %v741_v58 = vld [vmem:[%s3030_s2 + $0x28] sm:$0xff]  ;;  %v742_v59 = vld [vmem:[%s3030_s2 + $0x30] sm:$0xff] }
  0x14   :  { %1565 = vmatmul.mubr.msk.f32.vlgmr.msra.gmra.mrb[0].mxu0 %vm319_vm0, %v301_v12  ;;  %v2232_v60 = vld [vmem:[%s3029_s6 + $0x50] sm:$0xff]  ;;  %v2237_v61 = vld [vmem:[%s3029_s6 + $0x58] sm:$0xff]  ;;  %v2248_v0 = vld [vmem:[%s3029_s6 + $0x60] sm:$0xff] }
  0x15   :  { %1567 = vmatprep.mubr.msk.f32.mxu0 %vm319_vm0, %v302_v13  ;;  %1751 = vmatpush3.bf16.msra.mxu0 %v1750_v30  ;;  %v1765_v63 = vpack.c.bf16 %v2237_v61, %v2232_v60  ;;  %v2253_v1 = vld [vmem:[%s3029_s6 + $0x68] sm:$0xff]  ;;  %v743_v2 = vld [vmem:[%s3030_s2 + $0x38] sm:$0xff]  ;;  %v2266_v4 = vld [vmem:[%s3029_s6 + $0x70] sm:$0xff] }
  0x16   :  { %1752 = vmatprep.subr.bf16.mxu0 %v3007_v34  ;;  %v1768_v3 = vpack.c.bf16 %v2253_v1, %v2248_v0  ;;  %v2271_v5 = vld [vmem:[%s3029_s6 + $0x78] sm:$0xff]  ;;  %v1408_v7 = vld [vmem:[%s3026_s30] ss:$0 sm:$0xff] }
  0x17   :  { %v66_v19 = vld [vmem:[%s3028_s27] sm:$0xff]  ;;  %v67_v20 = vld [vmem:[%s3028_s27 + $0x8] sm:$0xff]  ;;  %v68_v29 = vld [vmem:[%s3028_s27 + $0x10] sm:$0xff]  ;;  %v1771_v6 = vpack.c.bf16 %v2271_v5, %v2266_v4 }
  0x18   :  { %1568 = vmatmul.mubr.msk.f32.gmra.mrb[2].mxu0 %vm319_vm0, %v303_v14  ;;  %v70_v21 = vmul.f32 0.999, %v66_v19  ;;  %v71_v22 = vmul.f32 0.999, %v67_v20  ;;  %v69_v31 = vld [vmem:[%s3028_s27 + $0x18] sm:$0xff] }
  0x19   :  { %1570 = vmatprep.mubr.msk.f32.mxu0 %vm319_vm0, %v304_v15  ;;  %v72_v32 = vmul.f32 0.999, %v68_v29  ;;  %v73_v36 = vmul.f32 0.999, %v69_v31  ;;  %1754 = vmatpush3.bf16.msra.mxu0 %v1753_v42 }
  0x1a   :  { %v82_v25 = vadd.f32 %v78_v23, %v70_v21  ;;  %v83_v28 = vadd.f32 %v79_v24, %v71_v22  ;;  %1755 = vmatprep.subr.bf16.mxu0 %v3007_v34 }
  0x1b   :  { %v84_v38 = vadd.f32 %v80_v33, %v72_v32  ;;  %v85_v41 = vadd.f32 %v81_v37, %v73_v36 }
  0x1c   :  { %1571 = vmatmul.mubr.msk.f32.gmra.mrb[4].mxu0 %vm319_vm0, %v305_v16  ;;  %v1797_v35 = vpack.c.bf16 %v83_v28, %v82_v25  ;;  %261 = vst [vmem:[%s3031_s28] sm:$0xff] %v82_v25  ;;  %262 = vst [vmem:[%s3031_s28 + $0x8] sm:$0xff] %v83_v28 }
  0x1d   :  { %1573 = vmatprep.mubr.msk.f32.mxu0 %vm319_vm0, %v306_v17  ;;  %v1801_v43 = vpack.c.bf16 %v85_v41, %v84_v38  ;;  %1757 = vmatpush3.bf16.msra.mxu0 %v1756_v47  ;;  %263 = vst [vmem:[%s3031_s28 + $0x10] sm:$0xff] %v84_v38  ;;  %264 = vst [vmem:[%s3031_s28 + $0x18] sm:$0xff] %v85_v41 }
  0x1e   :  { %1798 = vmatprep.subr.bf16.mxu1 %v1797_v35  ;;  %1758 = vmatprep.subr.bf16.mxu0 %v3007_v34 }
  0x1f   :  { %1800 = vmatpush3.bf16.msra.mxu1 %v1797_v35 }
  0x20   :  { %1574 = vmatmul.mubr.msk.f32.gmra.mrb[6].mxu0 %vm319_vm0, %v307_v18  ;;  %1802 = vmatprep.subr.bf16.mxu1 %v1801_v43 }
  0x21   :  { %1760 = vmatpush3.bf16.msra.mxu0 %v1759_v52  ;;  %1608 = vmatprep.mubr.msk.f32.mxu0 %vm1925_vm1, %v3009_v62 }
  0x22   :  { %1761 = vmatprep.subr.bf16.mxu0 %v3007_v34 }
  0x23   :  { %1804 = vmatpush3.bf16.msra.mxu1 %v1801_v43 }
  0x24   :  { %1829 = vmatprep.subr.bf16.mxu1 %v3007_v34 }
  0x25   :  { %1763 = vmatpush3.bf16.msra.mxu0 %v1762_v57 }
  0x26   :  { %1655 = vmatmul.mubr.msk.f32.vlgmr.msra.gmra.mrb[0].mxu1 %vm319_vm0, %v737_v48  ;;  %1764 = vmatprep.subr.bf16.mxu0 %v3007_v34 }
  0x27   :  { %1657 = vmatprep.mubr.msk.f32.mxu1 %vm319_vm0, %v738_v51 }
  0x29   :  { %1766 = vmatpush3.bf16.msra.mxu0 %v1765_v63 }
  0x2a   :  { %1658 = vmatmul.mubr.msk.f32.gmra.mrb[2].mxu1 %vm319_vm0, %v739_v53  ;;  %1767 = vmatprep.subr.bf16.mxu0 %v3007_v34 }
  0x2b   :  { %1660 = vmatprep.mubr.msk.f32.mxu1 %vm319_vm0, %v740_v56 }
  0x2d   :  { %1769 = vmatpush3.bf16.msra.mxu0 %v1768_v3 }
  0x2e   :  { %1661 = vmatmul.mubr.msk.f32.gmra.mrb[4].mxu1 %vm319_vm0, %v741_v58  ;;  %1770 = vmatprep.subr.bf16.mxu0 %v3007_v34 }
  0x2f   :  { %1663 = vmatprep.mubr.msk.f32.mxu1 %vm319_vm0, %v742_v59 }
  0x31   :  { %1772 = vmatpush3.bf16.msra.mxu0 %v1771_v6 }
  0x32   :  { %1664 = vmatmul.mubr.msk.f32.gmra.mrb[6].mxu1 %vm319_vm0, %v743_v2  ;;  %1773 = vmatprep.subr.bf16.mxu0 %v3007_v34 }
  0x33   :  { %1733 = vmatprep.mubr.msk.f32.mxu1 %vm1925_vm1, %v3009_v62 }
  0xe7   :  { %v1566_v8 = vpop.f32.mrb[0].mxu0 }
  0xe8   :  { %v416_v9 = vadd.f32 %v1566_v8, %v1408_v7  ;;  %v410_v10 = vpop.f32.mrb[1].mxu0 }
  0xe9   :  { %v411_v12 = vadd.f32 %v1408_v7, %v410_v10 }
  0xea   :  { %1888 = vtanh.f32 %v416_v9 }
  0xeb   :  { %1890 = vtanh.f32 %v411_v12  ;;  %v1569_v13 = vpop.f32.mrb[2].mxu0 }
  0xec   :  { %v426_v14 = vadd.f32 %v1569_v13, %v1408_v7  ;;  %v420_v15 = vpop.f32.mrb[3].mxu0 }
  0xed   :  { %v421_v16 = vadd.f32 %v1408_v7, %v420_v15 }
  0xee   :  { %1892 = vtanh.f32 %v426_v14 }
  0xef   :  { %1894 = vtanh.f32 %v421_v16  ;;  %v1572_v17 = vpop.f32.mrb[4].mxu0 }
  0xf0   :  { %v436_v18 = vadd.f32 %v1572_v17, %v1408_v7  ;;  %v430_v19 = vpop.f32.mrb[5].mxu0 }
  0xf1   :  { %v431_v20 = vadd.f32 %v1408_v7, %v430_v19 }
  0xf2   :  { %1896 = vtanh.f32 %v436_v18 }
  0xf3   :  { %1898 = vtanh.f32 %v431_v20  ;;  %v1575_v21 = vpop.f32.mrb[6].mxu0 }
  0xf4   :  { %v1889_v22 = vpop.eup %1888  ;;  %v446_v23 = vadd.f32 %v1575_v21, %v1408_v7  ;;  %v440_v24 = vpop.f32.mrb[7].mxu0 }
  0xf5   :  { %v1891_v25 = vpop.eup %1890  ;;  %458 = vst [vmem:[%s3032_s21 + $0x8] sm:$0xff] %v1889_v22  ;;  %v471_v28 = vrot.slane %v1889_v22, 4  ;;  %v441_v29 = vadd.f32 %v1408_v7, %v440_v24 }
  0xf6   :  { %457 = vst [vmem:[%s3032_s21] sm:$0xff] %v1891_v25  ;;  %v465_v30 = vrot.slane %v1891_v25, 4  ;;  %1900 = vtanh.f32 %v446_v23 }
  0xf7   :  { %v472_v31 = vadd.f32 %v1889_v22, %v471_v28  ;;  %1902 = vtanh.f32 %v441_v29 }
  0xf8   :  { %v1893_v32 = vpop.eup %1892  ;;  %v466_v33 = vadd.f32 %v1891_v25, %v465_v30 }
  0xf9   :  { %v1895_v35 = vpop.eup %1894  ;;  %v473_v36 = vrot.slane %v472_v31, 2  ;;  %460 = vst [vmem:[%s3032_s21 + $0x18] sm:$0xff] %v1893_v32  ;;  %v483_v37 = vrot.slane %v1893_v32, 4 }
  0xfa   :  { %v467_v38 = vrot.slane %v466_v33, 2  ;;  %459 = vst [vmem:[%s3032_s21 + $0x10] sm:$0xff] %v1895_v35  ;;  %v477_v41 = vrot.slane %v1895_v35, 4 }
  0xfb   :  { %v474_v42 = vadd.f32 %v473_v36, %v472_v31  ;;  %v484_v43 = vadd.f32 %v1893_v32, %v483_v37 }
  0xfc   :  { %v1897_v46 = vpop.eup %1896  ;;  %v478_v47 = vadd.f32 %v1895_v35, %v477_v41  ;;  %v468_v48 = vadd.f32 %v467_v38, %v466_v33 }
  0xfd   :  { %v1899_v51 = vpop.eup %1898  ;;  %462 = vst [vmem:[%s3032_s21 + $0x28] sm:$0xff] %v1897_v46  ;;  %v475_v52 = vrot.slane %v474_v42, 1  ;;  %v485_v53 = vrot.slane %v484_v43, 2  ;;  %v495_v56 = vrot.slane %v1897_v46, 4 }
  0xfe   :  { %461 = vst [vmem:[%s3032_s21 + $0x20] sm:$0xff] %v1899_v51  ;;  %v469_v57 = vrot.slane %v468_v48, 1  ;;  %v479_v58 = vrot.slane %v478_v47, 2  ;;  %v489_v59 = vrot.slane %v1899_v51, 4 }
  0xff   :  { %v476_v63 = vadd.f32 %v475_v52, %v474_v42  ;;  %v486_v2 = vadd.f32 %v485_v53, %v484_v43  ;;  %v496_v3 = vadd.f32 %v1897_v46, %v495_v56 }
 0x100   :  { %v1901_v6 = vpop.eup %1900  ;;  %v470_v7 = vadd.f32 %v469_v57, %v468_v48  ;;  %v480_v8 = vadd.f32 %v479_v58, %v478_v47  ;;  %v490_v9 = vadd.f32 %v1899_v51, %v489_v59  ;;  %v2313_v57 = vld [vmem:[%s2983_s8] sm:$0xff]  ;;  %v2318_v58 = vld [vmem:[%s2983_s8 + $0x8] sm:$0xff] }
 0x101   :  { %v1903_v10 = vpop.eup %1902  ;;  %464 = vst [vmem:[%s3032_s21 + $0x38] sm:$0xff] %v1901_v6  ;;  %v487_v12 = vrot.slane %v486_v2, 1  ;;  %v497_v13 = vrot.slane %v496_v3, 2  ;;  %v507_v14 = vrot.slane %v1901_v6, 4  ;;  %v514_v15 = vmul.f32 0.125, %v476_v63 }
 0x102   :  { %463 = vst [vmem:[%s3032_s21 + $0x30] sm:$0xff] %v1903_v10  ;;  %v481_v16 = vrot.slane %v480_v8, 1  ;;  %v491_v17 = vrot.slane %v490_v9, 2  ;;  %v501_v18 = vrot.slane %v1903_v10, 4  ;;  %v513_v19 = vmul.f32 0.125, %v470_v7  ;;  %v2327_v7 = vld [vmem:[%s2983_s8 + $0x10] sm:$0xff] }
 0x103   :  { %v488_v20 = vadd.f32 %v487_v12, %v486_v2  ;;  %v498_v21 = vadd.f32 %v497_v13, %v496_v3  ;;  %v508_v22 = vadd.f32 %v1901_v6, %v507_v14  ;;  %v1774_v3 = vpack.c.bf16 %v2318_v58, %v2313_v57  ;;  %v2343_v12 = vld [vmem:[%s2983_s8 + $0x20] sm:$0xff]  ;;  %v2348_v13 = vld [vmem:[%s2983_s8 + $0x28] sm:$0xff] }
 0x104   :  { %v482_v23 = vadd.f32 %v481_v16, %v480_v8  ;;  %v492_v24 = vadd.f32 %v491_v17, %v490_v9  ;;  %v502_v25 = vadd.f32 %v1903_v10, %v501_v18  ;;  %v553_v28 = vsel %vm552_vm2, %v514_v15, %v513_v19  ;;  %v2332_v8 = vld [vmem:[%s2983_s8 + $0x18] sm:$0xff]  ;;  %v2356_v15 = vld [vmem:[%s2983_s8 + $0x30] sm:$0xff]  ;;  %v2369_v18 = vld [vmem:[%s2983_s8 + $0x40] sm:$0xff] }
 0x105   :  { %v499_v29 = vrot.slane %v498_v21, 1  ;;  %v509_v30 = vrot.slane %v508_v22, 2  ;;  %v516_v37 = vmul.f32 0.125, %v488_v20  ;;  %v1777_v10 = vpack.c.bf16 %v2332_v8, %v2327_v7  ;;  %v2361_v16 = vld [vmem:[%s2983_s8 + $0x38] sm:$0xff]  ;;  %v2374_v19 = vld [vmem:[%s2983_s8 + $0x48] sm:$0xff] }
 0x106   :  { %v493_v31 = vrot.slane %v492_v24, 1  ;;  %v503_v32 = vrot.slane %v502_v25, 2  ;;  %v515_v33 = vmul.f32 0.125, %v482_v23  ;;  %v1780_v14 = vpack.c.bf16 %v2348_v13, %v2343_v12 }
 0x107   :  { %v500_v35 = vadd.f32 %v499_v29, %v498_v21  ;;  %v510_v36 = vadd.f32 %v509_v30, %v508_v22  ;;  %v1783_v17 = vpack.c.bf16 %v2361_v16, %v2356_v15  ;;  %v1786_v20 = vpack.c.bf16 %v2374_v19, %v2369_v18  ;;  %v2382_v21 = vld [vmem:[%s2983_s8 + $0x50] sm:$0xff]  ;;  %v2387_v22 = vld [vmem:[%s2983_s8 + $0x58] sm:$0xff] }
 0x108   :  { %v494_v38 = vadd.f32 %v493_v31, %v492_v24  ;;  %v504_v41 = vadd.f32 %v503_v32, %v502_v25  ;;  %v555_v42 = vsel %vm554_vm3, %v515_v33, %v553_v28  ;;  %v1789_v23 = vpack.c.bf16 %v2387_v22, %v2382_v21  ;;  %v2395_v24 = vld [vmem:[%s2983_s8 + $0x60] sm:$0xff]  ;;  %v2400_v25 = vld [vmem:[%s2983_s8 + $0x68] sm:$0xff]  ;;  %v2408_v29 = vld [vmem:[%s2983_s8 + $0x70] sm:$0xff] }
 0x109   :  { %v511_v43 = vrot.slane %v510_v36, 1  ;;  %v557_v46 = vsel %vm556_vm4, %v516_v37, %v555_v42  ;;  %v518_v52 = vmul.f32 0.125, %v500_v35  ;;  %v1792_v28 = vpack.c.bf16 %v2400_v25, %v2395_v24  ;;  %v2413_v30 = vld [vmem:[%s2983_s8 + $0x78] sm:$0xff]  ;;  %v1656_v37 = vpop.f32.mrb[0].mxu1 }
 0x10a   :  { %v505_v47 = vrot.slane %v504_v41, 1  ;;  %v517_v48 = vmul.f32 0.125, %v494_v38  ;;  %v1795_v31 = vpack.c.bf16 %v2413_v30, %v2408_v29  ;;  %v745_v32 = vlaneseq }
 0x10b   :  { %v512_v51 = vadd.f32 %v511_v43, %v510_v36 }
 0x10c   :  { %v506_v53 = vadd.f32 %v505_v47, %v504_v41  ;;  %v559_v56 = vsel %vm558_vm5, %v517_v48, %v557_v46  ;;  %v746_v33 = vshrl.u32 %v745_v32, 7  ;;  %v840_v41 = vpop.f32.mrb[1].mxu1  ;;  %v91_v32 = vld [vmem:[%s2984_s12] sm:$0xff] }
 0x10d   :  { %v561_v59 = vsel %vm560_vm6, %v518_v52, %v559_v56  ;;  %v520_v2 = vmul.f32 0.125, %v512_v51  ;;  %v1659_v43 = vpop.f32.mrb[2].mxu1 }
 0x10e   :  { %v519_v63 = vmul.f32 0.125, %v506_v53  ;;  %v2419_v35 = vsub.s32 0, %v746_v33  ;;  %v850_v47 = vpop.f32.mrb[3].mxu1  ;;  %v92_v33 = vld [vmem:[%s2984_s12 + $0x8] sm:$0xff] }
 0x10f   :  { %v1662_v51 = vpop.f32.mrb[4].mxu1 }
 0x110   :  { %v563_v6 = vsel %vm562_vm7, %v519_v63, %v561_v59  ;;  %3033 = vst [vmem:[#allocation3_spill] sm:$0xff] %v2419_v35  ;;  %v748_v36 = vrot.slane %v2079_v11, %v2419_v35  ;;  %v860_v53 = vpop.f32.mrb[5].mxu1 }
 0x111   :  { %v565_v9 = vsel %vm564_vm8, %v520_v2, %v563_v6  ;;  %v1665_v59 = vpop.f32.mrb[6].mxu1 }
 0x112   :  { %1609 = vmatmul.mubr.f32.vlgmr.msra.gmra.mrb[8].mxu0 %v565_v9  ;;  %v846_v38 = vadd.f32 %v1656_v37, %v748_v36  ;;  %v841_v42 = vadd.f32 %v840_v41, %v748_v36  ;;  %v856_v46 = vadd.f32 %v1659_v43, %v748_v36  ;;  %v851_v48 = vadd.f32 %v850_v47, %v748_v36  ;;  %v870_v2 = vpop.f32.mrb[7].mxu1 }
 0x113   :  { %1775 = vmatpush3.bf16.msra.mxu0 %v1774_v3  ;;  %1643 = vmatprep.mubr.msk.f32.mxu0 %vm1925_vm1, %v3009_v62  ;;  %v866_v52 = vadd.f32 %v1662_v51, %v748_v36  ;;  %v861_v56 = vadd.f32 %v860_v53, %v748_v36  ;;  %v876_v63 = vadd.f32 %v1665_v59, %v748_v36  ;;  %v108_v41 = vmul.f32 0.999, %v92_v33 }
 0x114   :  { %1776 = vmatprep.subr.bf16.mxu0 %v3007_v34  ;;  %1904 = vtanh.f32 %v846_v38  ;;  %v871_v9 = vadd.f32 %v870_v2, %v748_v36  ;;  %v107_v36 = vmul.f32 0.999, %v91_v32  ;;  %v140_v47 = vmul.f32 0.001, %v2127_v27  ;;  %v94_v32 = vld [vmem:[%s2984_s12 + $0x18] sm:$0xff] }
 0x115   :  { %1906 = vtanh.f32 %v841_v42 }
 0x116   :  { %1908 = vtanh.f32 %v856_v46  ;;  %v139_v46 = vmul.f32 0.001, %v2122_v26  ;;  %v93_v26 = vld [vmem:[%s2984_s12 + $0x10] sm:$0xff] }
 0x117   :  { %1778 = vmatpush3.bf16.msra.mxu0 %v1777_v10  ;;  %1910 = vtanh.f32 %v851_v48 }
 0x118   :  { %1779 = vmatprep.subr.bf16.mxu0 %v3007_v34  ;;  %1912 = vtanh.f32 %v866_v52 }
 0x119   :  { %1914 = vtanh.f32 %v861_v56 }
 0x11a   :  { %1916 = vtanh.f32 %v876_v63  ;;  %v2431_v63 = vadd.f32 %v139_v46, %v107_v36  ;;  %v109_v46 = vmul.f32 0.999, %v93_v26  ;;  %v142_v26 = vmul.f32 0.001, %v2147_v40 }
 0x11b   :  { %1781 = vmatpush3.bf16.msra.mxu0 %v1780_v14  ;;  %1918 = vtanh.f32 %v871_v9  ;;  %v2433_v9 = vadd.f32 %v140_v47, %v108_v41  ;;  %v144_v40 = vmul.f32 0.001, %v2160_v45 }
 0x11c   :  { %1782 = vmatprep.subr.bf16.mxu0 %v3007_v34  ;;  %266 = vst [vmem:[%s2985_s22] sm:$0xff] %v2431_v63 }
 0x11d   :  { %267 = vst [vmem:[%s2985_s22 + $0x8] sm:$0xff] %v2433_v9 }
 0x11e   :  { %v1905_v11 = vpop.eup %1904 }
 0x11f   :  { %1784 = vmatpush3.bf16.msra.mxu0 %v1783_v17  ;;  %v1907_v3 = vpop.eup %1906  ;;  %v893_v6 = vrot.slane %v1905_v11, 4 }
 0x120   :  { %1785 = vmatprep.subr.bf16.mxu0 %v3007_v34  ;;  %v887_v10 = vrot.slane %v1907_v3, 4  ;;  %v1909_v17 = vpop.eup %1908 }
 0x121   :  { %v894_v14 = vadd.f32 %v1905_v11, %v893_v6 }
 0x123   :  { %1787 = vmatpush3.bf16.msra.mxu0 %v1786_v20  ;;  %v888_v20 = vadd.f32 %v1907_v3, %v887_v10 }
 0x124   :  { %1788 = vmatprep.subr.bf16.mxu0 %v3007_v34  ;;  %v95_v47 = vld [vmem:[%s2984_s12 + $0x20] sm:$0xff] }
 0x125   :  { %v889_v37 = vrot.slane %v888_v20, 2  ;;  %v111_v62 = vmul.f32 0.999, %v95_v47 }
 0x127   :  { %1790 = vmatpush3.bf16.msra.mxu0 %v1789_v23  ;;  %v1911_v23 = vpop.eup %1910  ;;  %v890_v51 = vadd.f32 %v889_v37, %v888_v20 }
 0x128   :  { %1791 = vmatprep.subr.bf16.mxu0 %v3007_v34  ;;  %v899_v38 = vrot.slane %v1911_v23, 4  ;;  %v1913_v48 = vpop.eup %1912 }
 0x129   :  { %v1915_v53 = vpop.eup %1914  ;;  %v917_v11 = vrot.slane %v1913_v48, 4  ;;  %v891_v2 = vrot.slane %v890_v51, 1 }
 0x12a   :  { %v900_v52 = vadd.f32 %v1911_v23, %v899_v38  ;;  %v911_v6 = vrot.slane %v1915_v53, 4  ;;  %v1917_v27 = vpop.eup %1916 }
 0x12b   :  { %1793 = vmatpush3.bf16.msra.mxu0 %v1792_v28  ;;  %v895_v28 = vrot.slane %v894_v14, 2  ;;  %v892_v20 = vadd.f32 %v891_v2, %v890_v51  ;;  %v1919_v33 = vpop.eup %1918  ;;  %v929_v36 = vrot.slane %v1917_v27, 4  ;;  %v141_v2 = vmul.f32 0.001, %v2142_v39  ;;  %v98_v39 = vld [vmem:[%s2984_s12 + $0x38] sm:$0xff] }
 0x12c   :  { %1794 = vmatprep.subr.bf16.mxu0 %v3007_v34  ;;  %v901_v3 = vrot.slane %v900_v52, 2 }
 0x12d   :  { %v896_v42 = vadd.f32 %v895_v28, %v894_v14  ;;  %v912_v28 = vadd.f32 %v1915_v53, %v911_v6  ;;  %v935_v51 = vmul.f32 0.125, %v892_v20  ;;  %v110_v53 = vmul.f32 0.999, %v94_v32 }
 0x12e   :  { %v902_v23 = vadd.f32 %v901_v3, %v900_v52  ;;  %v96_v3 = vld [vmem:[%s2984_s12 + $0x28] sm:$0xff]  ;;  %v2459_v20 = vadd.f32 %v141_v2, %v109_v46  ;;  %v114_v32 = vmul.f32 0.999, %v98_v39 }
 0x12f   :  { %1796 = vmatpush3.bf16.msra.mxu0 %v1795_v31  ;;  %v905_v31 = vrot.slane %v1909_v17, 4  ;;  %v897_v56 = vrot.slane %v896_v42, 1 }
 0x130   :  { %1805 = vmatprep.subr.bf16.mxu0 %v3007_v34  ;;  %v903_v41 = vrot.slane %v902_v23, 1  ;;  %v930_v34 = vadd.f32 %v1917_v27, %v929_v36  ;;  %v143_v27 = vmul.f32 0.001, %v2155_v44  ;;  %v146_v36 = vmul.f32 0.001, %v2182_v50 }
 0x131   :  { %v906_v43 = vadd.f32 %v1909_v17, %v905_v31  ;;  %v898_v10 = vadd.f32 %v897_v56, %v896_v42  ;;  %v918_v17 = vadd.f32 %v1913_v48, %v917_v11  ;;  %v913_v42 = vrot.slane %v912_v28, 2 }
 0x132   :  { %v904_v6 = vadd.f32 %v903_v41, %v902_v23  ;;  %v112_v23 = vmul.f32 0.999, %v96_v3 }
 0x133   :  { %v907_v59 = vrot.slane %v906_v43, 2  ;;  %v919_v38 = vrot.slane %v918_v17, 2  ;;  %v936_v48 = vmul.f32 0.125, %v898_v10 }
 0x134   :  { %v2484_v45 = vadd.f32 %v144_v40, %v112_v23  ;;  %v149_v40 = vmul.f32 0.001, %v2232_v60 }
 0x135   :  { %v908_v14 = vadd.f32 %v907_v59, %v906_v43  ;;  %v923_v43 = vrot.slane %v1919_v33, 4  ;;  %v920_v56 = vadd.f32 %v919_v38, %v918_v17  ;;  %v914_v59 = vadd.f32 %v913_v42, %v912_v28 }
 0x136   :  { %v2467_v17 = vadd.f32 %v142_v26, %v110_v53  ;;  %v2482_v38 = vadd.f32 %v143_v27, %v111_v62  ;;  %v2505_v62 = vadd.f32 %v146_v36, %v114_v32 }
 0x137   :  { %v909_v37 = vrot.slane %v908_v14, 1  ;;  %v924_v11 = vadd.f32 %v1919_v33, %v923_v43  ;;  %v915_v35 = vrot.slane %v914_v59, 1  ;;  %v145_v33 = vmul.f32 0.001, %v2177_v49 }
 0x138   :  { %v1809_v44 = vpack.c.bf16 %v2467_v17, %v2459_v20  ;;  %v921_v46 = vrot.slane %v920_v56, 1  ;;  %v1812_v50 = vpack.c.bf16 %v2484_v45, %v2482_v38 }
 0x139   :  { %v910_v52 = vadd.f32 %v909_v37, %v908_v14  ;;  %v925_v10 = vrot.slane %v924_v11, 2  ;;  %v97_v14 = vld [vmem:[%s2984_s12 + $0x30] sm:$0xff]  ;;  %v916_v43 = vadd.f32 %v915_v35, %v914_v59  ;;  %v937_v35 = vmul.f32 0.125, %v904_v6 }
 0x13a   :  { %268 = vst [vmem:[%s2985_s22 + $0x10] sm:$0xff] %v2459_v20  ;;  %v113_v28 = vmul.f32 0.999, %v97_v14  ;;  %269 = vst [vmem:[%s2985_s22 + $0x18] sm:$0xff] %v2467_v17  ;;  %v147_v59 = vmul.f32 0.001, %v2198_v54  ;;  %v922_v2 = vadd.f32 %v921_v46, %v920_v56 }
 0x13b   :  { %v938_v31 = vmul.f32 0.125, %v910_v52  ;;  %v926_v37 = vadd.f32 %v925_v10, %v924_v11  ;;  %v148_v11 = vmul.f32 0.001, %v2203_v55  ;;  %v931_v6 = vrot.slane %v930_v34, 2  ;;  %v177_v20 = vld [vmem:[%s2987_s14 + $0x8] sm:$0xff] }
 0x13c   :  { %v2487_v41 = vadd.f32 %v145_v33, %v113_v28  ;;  %v957_v10 = vsel %vm552_vm2, %v936_v48, %v935_v51  ;;  %v939_v56 = vmul.f32 0.125, %v916_v43  ;;  %v150_v51 = vmul.f32 0.001, %v2237_v61 }
 0x13d   :  { %v927_v47 = vrot.slane %v926_v37, 1  ;;  %v932_v28 = vadd.f32 %v931_v6, %v930_v34  ;;  %v940_v32 = vmul.f32 0.125, %v922_v2  ;;  %v958_v33 = vsel %vm554_vm3, %v937_v35, %v957_v10 }
 0x13e   :  { %v1815_v3 = vpack.c.bf16 %v2505_v62, %v2487_v41  ;;  %v959_v36 = vsel %vm556_vm4, %v938_v31, %v958_v33  ;;  %v152_v35 = vmul.f32 0.001, %v2253_v1  ;;  %v3035_v33 = vmov 0.0  }
 0x13f   :  { %v928_v26 = vadd.f32 %v927_v47, %v926_v37  ;;  %v933_v34 = vrot.slane %v932_v28, 1  ;;  %v960_v46 = vsel %vm558_vm5, %v939_v56, %v959_v36  ;;  %v154_v56 = vmul.f32 0.001, %v2271_v5 }
 0x140   :  { %v3034_v5 = vpack.c.bf16 %v2433_v9, %v2431_v63  ;;  %v173_v63 = vld [vmem:[%s2986_s7] sm:$0x1] }
 0x141   :  { %v99_v49 = vld [vmem:[%s2984_s12 + $0x40] sm:$0xff]  ;;  %v100_v42 = vld [vmem:[%s2984_s12 + $0x48] sm:$0xff]  ;;  %v941_v37 = vmul.f32 0.125, %v928_v26  ;;  %v934_v31 = vadd.f32 %v933_v34, %v932_v28  ;;  %v226_v34 = vmul.f32 0.001, %v2327_v7 }
 0x142   :  { %270 = vst [vmem:[%s2985_s22 + $0x20] sm:$0xff] %v2482_v38  ;;  %271 = vst [vmem:[%s2985_s22 + $0x28] sm:$0xff] %v2484_v45  ;;  %v115_v52 = vmul.f32 0.999, %v99_v49  ;;  %v116_v53 = vmul.f32 0.999, %v100_v42 }
 0x143   :  { %272 = vst [vmem:[%s2985_s22 + $0x30] sm:$0xff] %v2487_v41  ;;  %273 = vst [vmem:[%s2985_s22 + $0x38] sm:$0xff] %v2505_v62  ;;  %v942_v2 = vmul.f32 0.125, %v934_v31  ;;  %v176_v9 = vld [vmem:[%s2987_s14] sm:$0xff]  ;;  %v224_v38 = vmul.f32 0.001, %v2313_v57 }
 0x144   :  { %v2520_v14 = vadd.f32 %v147_v59, %v115_v52  ;;  %v2522_v39 = vadd.f32 %v148_v11, %v116_v53  ;;  %v151_v52 = vmul.f32 0.001, %v2248_v0  ;;  %v961_v59 = vsel %vm560_vm6, %v940_v32, %v960_v46 }
 0x145   :  { %v962_v26 = vsel %vm562_vm7, %v941_v37, %v961_v59  ;;  %v192_v17 = vmul.f32 0.999, %v176_v9  ;;  %v225_v45 = vmul.f32 0.001, %v2318_v58  ;;  %v2620_v41 = vmul.f32 0.001, %v173_v63 }
 0x146   :  { %v1818_v48 = vpack.c.bf16 %v2522_v39, %v2520_v14  ;;  %v227_v37 = vmul.f32 0.001, %v2332_v8  ;;  %v237_v63 = vmul.f32 0.001, %v2400_v25 }
 0x14a   :  { %v101_v54 = vld [vmem:[%s2984_s12 + $0x50] sm:$0xff]  ;;  %v102_v55 = vld [vmem:[%s2984_s12 + $0x58] sm:$0xff] }
 0x14b   :  { %v117_v23 = vmul.f32 0.999, %v101_v54  ;;  %v118_v27 = vmul.f32 0.999, %v102_v55  ;;  %274 = vst [vmem:[%s2985_s22 + $0x40] sm:$0xff] %v2520_v14  ;;  %275 = vst [vmem:[%s2985_s22 + $0x48] sm:$0xff] %v2522_v39  ;;  %v963_v54 = vsel %vm564_vm8, %v942_v2, %v962_v26 }
 0x14c   :  { %v153_v39 = vmul.f32 0.001, %v2266_v4  ;;  %v232_v26 = vmul.f32 0.001, %v2369_v18 }
 0x14d   :  { %v165_v60 = vadd.f32 %v149_v40, %v117_v23  ;;  %v166_v49 = vadd.f32 %v150_v51, %v118_v27  ;;  %v1417_v40 = vld [vmem:[%s2986_s7] ss:$0 sm:$0xff] }
 0x14f   :  { %v1821_v53 = vpack.c.bf16 %v166_v49, %v165_v60 }
 0x152   :  { %v103_v42 = vld [vmem:[%s2984_s12 + $0x60] sm:$0xff]  ;;  %v104_v43 = vld [vmem:[%s2984_s12 + $0x68] sm:$0xff] }
 0x153   :  { %276 = vst [vmem:[%s2985_s22 + $0x50] sm:$0xff] %v165_v60  ;;  %v119_v61 = vmul.f32 0.999, %v103_v42  ;;  %v120_v47 = vmul.f32 0.999, %v104_v43  ;;  %277 = vst [vmem:[%s2985_s22 + $0x58] sm:$0xff] %v166_v49 }
 0x154   :  { %v3036_v60 = vmov 0.0|0.0   ;;  %v228_v43 = vmul.f32 0.001, %v2343_v12  ;;  %v231_v12 = vmul.f32 0.001, %v2361_v16 }
 0x155   :  { %v167_v11 = vadd.f32 %v151_v52, %v119_v61  ;;  %v168_v6 = vadd.f32 %v152_v35, %v120_v47  ;;  %v229_v47 = vmul.f32 0.001, %v2348_v13 }
 0x157   :  { %v1824_v55 = vpack.c.bf16 %v168_v6, %v167_v11 }
 0x15a   :  { %v105_v10 = vld [vmem:[%s2984_s12 + $0x70] sm:$0xff]  ;;  %v106_v0 = vld [vmem:[%s2984_s12 + $0x78] sm:$0xff] }
 0x15b   :  { %278 = vst [vmem:[%s2985_s22 + $0x60] sm:$0xff] %v167_v11  ;;  %v121_v1 = vmul.f32 0.999, %v105_v10  ;;  %v122_v14 = vmul.f32 0.999, %v106_v0  ;;  %279 = vst [vmem:[%s2985_s22 + $0x68] sm:$0xff] %v168_v6 }
 0x15c   :  { %v233_v6 = vmul.f32 0.001, %v2374_v19 }
 0x15d   :  { %v169_v23 = vadd.f32 %v153_v39, %v121_v1  ;;  %v170_v27 = vadd.f32 %v154_v56, %v122_v14 }
 0x15f   :  { %280 = vst [vmem:[%s2985_s22 + $0x70] sm:$0xff] %v169_v23  ;;  %281 = vst [vmem:[%s2985_s22 + $0x78] sm:$0xff] %v170_v27  ;;  %v1827_v4 = vpack.c.bf16 %v170_v27, %v169_v23 }
 0x1e5   :  { %v633_v28 = vpop.f32.mrb[8].mxu0 }
 0x1e6   :  { %v634_v51 = vadd.f32 %v1417_v40, %v633_v28  ;;  %v1610_v32 = vpop.f32.mrb[9].mxu0  ;;  %v171_v28 = vld [vmem:[%s2989_s13] sm:$0x1] }
 0x1e7   :  { %v172_v9 = vmul.f32 0.999, %v171_v28 }
 0x1e8   :  { %1644 = vmatmul.mubr.f32.vlgmr.msra.gmra.mrb[10].mxu0 %v634_v51 }
 0x1e9   :  { %1807 = vmatpush3.bf16.msra.mxu0 %v3034_v5  ;;  %1698 = vmatprep.mubr.msk.f32.mxu0 %vm1925_vm1, %v3035_v33 }
 0x1ea   :  { %1808 = vmatprep.subr.bf16.mxu0 %v3036_v60 }
 0x1ed   :  { %1810 = vmatpush3.bf16.msra.mxu0 %v1809_v44  ;;  %v193_v44 = vmul.f32 0.999, %v177_v20 }
 0x1ee   :  { %1811 = vmatprep.subr.bf16.mxu0 %v3036_v60 }
 0x1ef   :  { %v241_v62 = vadd.f32 %v225_v45, %v193_v44  ;;  %v175_v44 = vadd.f32 %v2620_v41, %v172_v9 }
 0x1f1   :  { %1813 = vmatpush3.bf16.msra.mxu0 %v1812_v50  ;;  %v240_v50 = vadd.f32 %v224_v38, %v192_v17  ;;  %282 = vst [vmem:[%s2990_s23] sm:$0x1] %v175_v44 }
 0x1f2   :  { %1814 = vmatprep.subr.bf16.mxu0 %v3036_v60 }
 0x1f3   :  { %v1830_v7 = vpack.c.bf16 %v241_v62, %v240_v50 }
 0x1f5   :  { %1816 = vmatpush3.bf16.msra.mxu0 %v1815_v3  ;;  %v178_v3 = vld [vmem:[%s2987_s14 + $0x10] sm:$0xff]  ;;  %1831 = vmatpush3.bf16.msra.mxu1 %v1830_v7  ;;  %v1418_v7 = vld [vmem:[%s2991_s9] ss:$0 sm:$0xff] }
 0x1f6   :  { %1817 = vmatprep.subr.bf16.mxu0 %v3036_v60  ;;  %v194_v57 = vmul.f32 0.999, %v178_v3  ;;  %1832 = vmatprep.subr.bf16.mxu1 %v3036_v60 }
 0x1f8   :  { %v242_v46 = vadd.f32 %v226_v34, %v194_v57  ;;  %v239_v34 = vmul.f32 0.001, %v2413_v30 }
 0x1f9   :  { %1819 = vmatpush3.bf16.msra.mxu0 %v1818_v48  ;;  %v179_v48 = vld [vmem:[%s2987_s14 + $0x18] sm:$0xff] }
 0x1fa   :  { %1820 = vmatprep.subr.bf16.mxu0 %v3036_v60  ;;  %283 = vst [vmem:[%s2988_s24] sm:$0xff] %v240_v50  ;;  %v195_v58 = vmul.f32 0.999, %v179_v48  ;;  %v238_v48 = vmul.f32 0.001, %v2408_v29  ;;  %v258_v29 = vld [vmem:[%s2991_s9] sm:$0x1] }
 0x1fb   :  { %v259_v30 = vmul.f32 0.001, %v258_v29 }
 0x1fc   :  { %v243_v61 = vadd.f32 %v227_v37, %v195_v58 }
 0x1fd   :  { %1822 = vmatpush3.bf16.msra.mxu0 %v1821_v53  ;;  %v230_v53 = vmul.f32 0.001, %v2356_v15 }
 0x1fe   :  { %1823 = vmatprep.subr.bf16.mxu0 %v3036_v60  ;;  %v1833_v13 = vpack.c.bf16 %v243_v61, %v242_v46 }
 0x200   :  { %1834 = vmatpush3.bf16.msra.mxu1 %v1833_v13 }
 0x201   :  { %1825 = vmatpush3.bf16.msra.mxu0 %v1824_v55  ;;  %v180_v36 = vld [vmem:[%s2987_s14 + $0x20] sm:$0xff]  ;;  %v181_v49 = vld [vmem:[%s2987_s14 + $0x28] sm:$0xff]  ;;  %v234_v55 = vmul.f32 0.001, %v2382_v21  ;;  %1835 = vmatprep.subr.bf16.mxu1 %v3036_v60 }
 0x202   :  { %1826 = vmatprep.subr.bf16.mxu0 %v3036_v60  ;;  %284 = vst [vmem:[%s2988_s24 + $0x8] sm:$0xff] %v241_v62  ;;  %v196_v8 = vmul.f32 0.999, %v180_v36  ;;  %v197_v42 = vmul.f32 0.999, %v181_v49 }
 0x203   :  { %v256_v36 = vld [vmem:[%s2992_s15] sm:$0x1] }
 0x204   :  { %v244_v35 = vadd.f32 %v228_v43, %v196_v8  ;;  %v245_v2 = vadd.f32 %v229_v47, %v197_v42 }
 0x205   :  { %1828 = vmatpush3.bf16.msra.mxu0 %v1827_v4  ;;  %v235_v4 = vmul.f32 0.001, %v2387_v22 }
 0x206   :  { %1736 = vmatprep.subr.mxu0 %v3035_v33  ;;  %v1836_v56 = vpack.c.bf16 %v245_v2, %v244_v35 }
 0x208   :  { %1699 = vmatmul.mubr.f32.vlgmr.msra.gmra.mrb[12].mxu0 %v963_v54  ;;  %1837 = vmatpush3.bf16.msra.mxu1 %v1836_v56 }
 0x209   :  { %1738 = vmatprep.mubr.msk.f32.mxu0 %vm1925_vm1, %v3035_v33  ;;  %v182_v52 = vld [vmem:[%s2987_s14 + $0x30] sm:$0xff]  ;;  %v183_v31 = vld [vmem:[%s2987_s14 + $0x38] sm:$0xff]  ;;  %v236_v33 = vmul.f32 0.001, %v2395_v24  ;;  %1838 = vmatprep.subr.bf16.mxu1 %v3036_v60 }
 0x20a   :  { %v198_v59 = vmul.f32 0.999, %v182_v52  ;;  %v199_v11 = vmul.f32 0.999, %v183_v31  ;;  %285 = vst [vmem:[%s2988_s24 + $0x10] sm:$0xff] %v242_v46  ;;  %286 = vst [vmem:[%s2988_s24 + $0x18] sm:$0xff] %v243_v61 }
 0x20b   :  { %v3037_v46 = vld [vmem:[#allocation3_spill] sm:$0xff] }
 0x20c   :  { %v246_v10 = vadd.f32 %v230_v53, %v198_v59  ;;  %v247_v0 = vadd.f32 %v231_v12, %v199_v11  ;;  %v947_v61 = vrot.slane %v175_v44, %v3037_v46  ;;  %v1212_v53 = vld [vmem:[%s2994_s16 + $0x80] sm:$0xff] }
 0x20d   :  { %v1196_v59 = vld [vmem:[%s2994_s16] sm:$0xff] }
 0x20e   :  { %v1839_v17 = vpack.c.bf16 %v247_v0, %v246_v10 }
 0x210   :  { %1840 = vmatpush3.bf16.msra.mxu1 %v1839_v17 }
 0x211   :  { %v184_v15 = vld [vmem:[%s2987_s14 + $0x40] sm:$0xff]  ;;  %v185_v16 = vld [vmem:[%s2987_s14 + $0x48] sm:$0xff]  ;;  %1841 = vmatprep.subr.bf16.mxu1 %v3036_v60 }
 0x212   :  { %287 = vst [vmem:[%s2988_s24 + $0x20] sm:$0xff] %v244_v35  ;;  %v200_v1 = vmul.f32 0.999, %v184_v15  ;;  %v201_v14 = vmul.f32 0.999, %v185_v16  ;;  %v1213_v35 = vld [vmem:[%s2994_s16 + $0x88] sm:$0xff] }
 0x213   :  { %v1853_v11 = vpack.c.bf16 %v1213_v35, %v1212_v53  ;;  %1352 = vst [vmem:[%s2995_s19 + $0x80] sm:$0xff] %v1212_v53  ;;  %1353 = vst [vmem:[%s2995_s19 + $0x88] sm:$0xff] %v1213_v35 }
 0x214   :  { %v248_v23 = vadd.f32 %v232_v26, %v200_v1  ;;  %v249_v27 = vadd.f32 %v233_v6, %v201_v14 }
 0x216   :  { %v1842_v25 = vpack.c.bf16 %v249_v27, %v248_v23 }
 0x218   :  { %1843 = vmatpush3.bf16.msra.mxu1 %v1842_v25 }
 0x219   :  { %v186_v39 = vld [vmem:[%s2987_s14 + $0x50] sm:$0xff]  ;;  %v187_v54 = vld [vmem:[%s2987_s14 + $0x58] sm:$0xff]  ;;  %1844 = vmatprep.subr.bf16.mxu1 %v3036_v60 }
 0x21a   :  { %288 = vst [vmem:[%s2988_s24 + $0x28] sm:$0xff] %v245_v2  ;;  %v202_v18 = vmul.f32 0.999, %v186_v39  ;;  %v203_v19 = vmul.f32 0.999, %v187_v54  ;;  %289 = vst [vmem:[%s2988_s24 + $0x30] sm:$0xff] %v246_v10 }
 0x21b   :  { %290 = vst [vmem:[%s2988_s24 + $0x38] sm:$0xff] %v247_v0  ;;  %v1197_v12 = vld [vmem:[%s2994_s16 + $0x8] sm:$0xff] }
 0x21c   :  { %v250_v51 = vadd.f32 %v234_v55, %v202_v18  ;;  %v251_v22 = vadd.f32 %v235_v4, %v203_v19  ;;  %1336 = vst [vmem:[%s2995_s19] sm:$0xff] %v1196_v59  ;;  %v1855_v15 = vpack.c.bf16 %v1197_v12, %v1196_v59 }
 0x21e   :  { %v1845_v38 = vpack.c.bf16 %v251_v22, %v250_v51 }
 0x220   :  { %1846 = vmatpush3.bf16.msra.mxu1 %v1845_v38 }
 0x221   :  { %1847 = vmatprep.subr.bf16.mxu1 %v3036_v60 }
 0x222   :  { %v188_v40 = vld [vmem:[%s2987_s14 + $0x60] sm:$0xff]  ;;  %v189_v21 = vld [vmem:[%s2987_s14 + $0x68] sm:$0xff] }
 0x223   :  { %v204_v32 = vmul.f32 0.999, %v188_v40  ;;  %v205_v5 = vmul.f32 0.999, %v189_v21  ;;  %291 = vst [vmem:[%s2988_s24 + $0x40] sm:$0xff] %v248_v23  ;;  %292 = vst [vmem:[%s2988_s24 + $0x48] sm:$0xff] %v249_v27 }
 0x224   :  { %293 = vst [vmem:[%s2988_s24 + $0x50] sm:$0xff] %v250_v51  ;;  %294 = vst [vmem:[%s2988_s24 + $0x58] sm:$0xff] %v251_v22  ;;  %v1214_v13 = vld [vmem:[%s2994_s16 + $0x90] sm:$0xff]  ;;  %v1215_v2 = vld [vmem:[%s2994_s16 + $0x98] sm:$0xff] }
 0x225   :  { %v252_v20 = vadd.f32 %v236_v33, %v204_v32  ;;  %v253_v24 = vadd.f32 %v237_v63, %v205_v5  ;;  %1337 = vst [vmem:[%s2995_s19 + $0x8] sm:$0xff] %v1197_v12  ;;  %v1857_v16 = vpack.c.bf16 %v1215_v2, %v1214_v13  ;;  %1354 = vst [vmem:[%s2995_s19 + $0x90] sm:$0xff] %v1214_v13 }
 0x226   :  { %1355 = vst [vmem:[%s2995_s19 + $0x98] sm:$0xff] %v1215_v2 }
 0x227   :  { %295 = vst [vmem:[%s2988_s24 + $0x60] sm:$0xff] %v252_v20  ;;  %296 = vst [vmem:[%s2988_s24 + $0x68] sm:$0xff] %v253_v24  ;;  %v1848_v45 = vpack.c.bf16 %v253_v24, %v252_v20 }
 0x229   :  { %1849 = vmatpush3.bf16.msra.mxu1 %v1848_v45 }
 0x22a   :  { %1850 = vmatprep.subr.bf16.mxu1 %v3036_v60  ;;  %v257_v60 = vmul.f32 0.999, %v256_v36 }
 0x22c   :  { %v2746_v49 = vadd.f32 %v259_v30, %v257_v60 }
 0x22d   :  { %v1198_v26 = vld [vmem:[%s2994_s16 + $0x10] sm:$0xff]  ;;  %v1199_v6 = vld [vmem:[%s2994_s16 + $0x18] sm:$0xff]  ;;  %v1216_v10 = vld [vmem:[%s2994_s16 + $0xa0] sm:$0xff] }
 0x22e   :  { %v190_v41 = vld [vmem:[%s2987_s14 + $0x70] sm:$0xff]  ;;  %v191_v50 = vld [vmem:[%s2987_s14 + $0x78] sm:$0xff]  ;;  %299 = vst [vmem:[%s2993_s25] sm:$0x1] %v2746_v49  ;;  %1338 = vst [vmem:[%s2995_s19 + $0x10] sm:$0xff] %v1198_v26  ;;  %v1859_v51 = vpack.c.bf16 %v1199_v6, %v1198_v26  ;;  %v1039_v24 = vrot.slane %v2746_v49, %v3037_v46  ;;  %s1369_s25 = scalar_lea.vmem %s2995_s19, %s2997_s0 }
 0x22f   :  { %v206_v62 = vmul.f32 0.999, %v190_v41  ;;  %v207_v3 = vmul.f32 0.999, %v191_v50  ;;  %1339 = vst [vmem:[%s2995_s19 + $0x18] sm:$0xff] %v1199_v6 }
 0x231   :  { %v254_v37 = vadd.f32 %v238_v48, %v206_v62  ;;  %v255_v57 = vadd.f32 %v239_v34, %v207_v3 }
 0x233   :  { %297 = vst [vmem:[%s2988_s24 + $0x70] sm:$0xff] %v254_v37  ;;  %298 = vst [vmem:[%s2988_s24 + $0x78] sm:$0xff] %v255_v57  ;;  %v1851_v58 = vpack.c.bf16 %v255_v57, %v254_v37 }
 0x235   :  { %1852 = vmatpush3.bf16.msra.mxu1 %v1851_v58 }
 0x236   :  { %1854 = vmatprep.subr.bf16.mxu1 %v1853_v11  ;;  %v1217_v0 = vld [vmem:[%s2994_s16 + $0xa8] sm:$0xff] }
 0x237   :  { %1356 = vst [vmem:[%s2995_s19 + $0xa0] sm:$0xff] %v1216_v10  ;;  %v1861_v32 = vpack.c.bf16 %v1217_v0, %v1216_v10 }
 0x23e   :  { %v1200_v1 = vld [vmem:[%s2994_s16 + $0x20] sm:$0xff]  ;;  %v1201_v14 = vld [vmem:[%s2994_s16 + $0x28] sm:$0xff] }
 0x23f   :  { %1357 = vst [vmem:[%s2995_s19 + $0xa8] sm:$0xff] %v1217_v0  ;;  %1340 = vst [vmem:[%s2995_s19 + $0x20] sm:$0xff] %v1200_v1  ;;  %v1863_v5 = vpack.c.bf16 %v1201_v14, %v1200_v1 }
 0x240   :  { %1341 = vst [vmem:[%s2995_s19 + $0x28] sm:$0xff] %v1201_v14 }
 0x247   :  { %v1218_v39 = vld [vmem:[%s2994_s16 + $0xb0] sm:$0xff]  ;;  %v1219_v54 = vld [vmem:[%s2994_s16 + $0xb8] sm:$0xff] }
 0x248   :  { %v1202_v18 = vld [vmem:[%s2994_s16 + $0x30] sm:$0xff]  ;;  %v1865_v33 = vpack.c.bf16 %v1219_v54, %v1218_v39 }
 0x249   :  { %1358 = vst [vmem:[%s2995_s19 + $0xb0] sm:$0xff] %v1218_v39  ;;  %1359 = vst [vmem:[%s2995_s19 + $0xb8] sm:$0xff] %v1219_v54 }
 0x250   :  { %v1203_v19 = vld [vmem:[%s2994_s16 + $0x38] sm:$0xff] }
 0x251   :  { %1342 = vst [vmem:[%s2995_s19 + $0x30] sm:$0xff] %v1202_v18  ;;  %v1867_v22 = vpack.c.bf16 %v1203_v19, %v1202_v18 }
 0x258   :  { %v1220_v55 = vld [vmem:[%s2994_s16 + $0xc0] sm:$0xff]  ;;  %v1221_v56 = vld [vmem:[%s2994_s16 + $0xc8] sm:$0xff] }
 0x259   :  { %1343 = vst [vmem:[%s2995_s19 + $0x38] sm:$0xff] %v1203_v19  ;;  %1360 = vst [vmem:[%s2995_s19 + $0xc0] sm:$0xff] %v1220_v55  ;;  %v1869_v63 = vpack.c.bf16 %v1221_v56, %v1220_v55 }
 0x25a   :  { %1361 = vst [vmem:[%s2995_s19 + $0xc8] sm:$0xff] %v1221_v56 }
 0x261   :  { %v1204_v23 = vld [vmem:[%s2994_s16 + $0x40] sm:$0xff]  ;;  %v1205_v27 = vld [vmem:[%s2994_s16 + $0x48] sm:$0xff]  ;;  %v1222_v4 = vld [vmem:[%s2994_s16 + $0xd0] sm:$0xff] }
 0x262   :  { %1344 = vst [vmem:[%s2995_s19 + $0x40] sm:$0xff] %v1204_v23  ;;  %1345 = vst [vmem:[%s2995_s19 + $0x48] sm:$0xff] %v1205_v27  ;;  %v1871_v9 = vpack.c.bf16 %v1205_v27, %v1204_v23 }
 0x269   :  { %v1223_v40 = vld [vmem:[%s2994_s16 + $0xd8] sm:$0xff] }
 0x26a   :  { %1362 = vst [vmem:[%s2995_s19 + $0xd0] sm:$0xff] %v1222_v4  ;;  %v1873_v20 = vpack.c.bf16 %v1223_v40, %v1222_v4 }
 0x271   :  { %v1206_v21 = vld [vmem:[%s2994_s16 + $0x50] sm:$0xff]  ;;  %v1207_v28 = vld [vmem:[%s2994_s16 + $0x58] sm:$0xff] }
 0x272   :  { %1363 = vst [vmem:[%s2995_s19 + $0xd8] sm:$0xff] %v1223_v40  ;;  %1346 = vst [vmem:[%s2995_s19 + $0x50] sm:$0xff] %v1206_v21  ;;  %v1875_v17 = vpack.c.bf16 %v1207_v28, %v1206_v21 }
 0x273   :  { %1347 = vst [vmem:[%s2995_s19 + $0x58] sm:$0xff] %v1207_v28 }
 0x27a   :  { %v1224_v50 = vld [vmem:[%s2994_s16 + $0xe0] sm:$0xff]  ;;  %v1225_v62 = vld [vmem:[%s2994_s16 + $0xe8] sm:$0xff] }
 0x27b   :  { %v1877_v3 = vpack.c.bf16 %v1225_v62, %v1224_v50  ;;  %1364 = vst [vmem:[%s2995_s19 + $0xe0] sm:$0xff] %v1224_v50  ;;  %1365 = vst [vmem:[%s2995_s19 + $0xe8] sm:$0xff] %v1225_v62 }
 0x282   :  { %v1208_v48 = vld [vmem:[%s2994_s16 + $0x60] sm:$0xff]  ;;  %v1209_v34 = vld [vmem:[%s2994_s16 + $0x68] sm:$0xff] }
 0x283   :  { %v1879_v37 = vpack.c.bf16 %v1209_v34, %v1208_v48  ;;  %1348 = vst [vmem:[%s2995_s19 + $0x60] sm:$0xff] %v1208_v48  ;;  %1349 = vst [vmem:[%s2995_s19 + $0x68] sm:$0xff] %v1209_v34 }
 0x28a   :  { %v1226_v57 = vld [vmem:[%s2994_s16 + $0xf0] sm:$0xff]  ;;  %v1227_v58 = vld [vmem:[%s2994_s16 + $0xf8] sm:$0xff] }
 0x28b   :  { %v1210_v29 = vld [vmem:[%s2994_s16 + $0x70] sm:$0xff]  ;;  %v1881_v30 = vpack.c.bf16 %v1227_v58, %v1226_v57 }
 0x28c   :  { %1366 = vst [vmem:[%s2995_s19 + $0xf0] sm:$0xff] %v1226_v57  ;;  %1367 = vst [vmem:[%s2995_s19 + $0xf8] sm:$0xff] %v1227_v58 }
 0x293   :  { %v1211_v36 = vld [vmem:[%s2994_s16 + $0x78] sm:$0xff] }
 0x294   :  { %1350 = vst [vmem:[%s2995_s19 + $0x70] sm:$0xff] %v1210_v29  ;;  %1351 = vst [vmem:[%s2995_s19 + $0x78] sm:$0xff] %v1211_v36  ;;  %v1883_v60 = vpack.c.bf16 %v1211_v36, %v1210_v29 }
 0x2bb   :  { %v726_v8 = vpop.f32.mrb[10].mxu0 }
 0x2bc   :  { %v2755_v42 = vadd.f32 %v1418_v7, %v726_v8  ;;  %v1645_v43 = vpop.f32.mrb[11].mxu0 }
 0x2be   :  { %v730_v41 = vmul.f32 %v2755_v42, %v2755_v42 }
 0x2db   :  { %v1031_v47 = vpop.f32.mrb[12].mxu0 }
 0x2dc   :  { %v1032_v52 = vadd.f32 %v1031_v47, %v947_v61  ;;  %v1700_v31 = vpop.f32.mrb[13].mxu0  ;;  %v1117_v47 = vld [vmem:[%s2996_s3] sm:$0xff] }
 0x2de   :  { %1734 = vmatmul.mubr.f32.vlgmr.msra.gmra.mrb[8].mxu1 %v1032_v52 }
 0x2df   :  { %1856 = vmatpush3.bf16.xpose.msra.mxu1 %v1855_v15 }
 0x2e0   :  { %1858 = vmatprep.subr.bf16.mxu1 %v1857_v16 }
 0x2e7   :  { %1860 = vmatpush3.bf16.xpose.msra.mxu1 %v1859_v51 }
 0x2e8   :  { %1862 = vmatprep.subr.bf16.mxu1 %v1861_v32 }
 0x2ef   :  { %1864 = vmatpush3.bf16.xpose.msra.mxu1 %v1863_v5 }
 0x2f0   :  { %1866 = vmatprep.subr.bf16.mxu1 %v1865_v33 }
 0x2f7   :  { %1868 = vmatpush3.bf16.xpose.msra.mxu1 %v1867_v22 }
 0x2f8   :  { %1870 = vmatprep.subr.bf16.mxu1 %v1869_v63 }
 0x2ff   :  { %1872 = vmatpush3.bf16.xpose.msra.mxu1 %v1871_v9 }
 0x300   :  { %1874 = vmatprep.subr.bf16.mxu1 %v1873_v20 }
 0x307   :  { %1876 = vmatpush3.bf16.xpose.msra.mxu1 %v1875_v17 }
 0x308   :  { %1878 = vmatprep.subr.bf16.mxu1 %v1877_v3 }
 0x30f   :  { %1880 = vmatpush3.bf16.xpose.msra.mxu1 %v1879_v37 }
 0x310   :  { %1882 = vmatprep.subr.bf16.mxu1 %v1881_v30 }
 0x317   :  { %1884 = vmatpush3.bf16.xpose.msra.mxu1 %v1883_v60 }
 0x3b1   :  { %v1107_v44 = vpop.f32.mrb[8].mxu1 }
 0x3b2   :  { %v1108_v25 = vadd.f32 %v1107_v44, %v1039_v24  ;;  %v1735_v38 = vpop.f32.mrb[9].mxu1 }
 0x3b4   :  { %v1111_v45 = vmul.f32 %v1108_v25, %v1108_v25 }
 0x3b6   :  { %1112 = vadd.xlane.f32.xlu0 %v1111_v45 }
 0x3ba   :  { %731 = vadd.xlane.f32.xlu0 %v730_v41 }
 0x443   :  { %v1113_v49 = vpop.xlane.xlu0 %1112 }
 0x444   :  { %v1114_v7 = vmax.f32 %v1113_v49, 1e-24 }
 0x446   :  { %1920 = vrsqrt.f32 %v1114_v7 }
 0x447   :  { %v732_v8 = vpop.xlane.xlu0 %731 }
 0x448   :  { %v733_v43 = vmax.f32 %v732_v8, 1e-24 }
 0x44a   :  { %1922 = vrsqrt.f32 %v733_v43 }
 0x450   :  { %v1921_v46 = vpop.eup %1920 }
 0x451   :  { %v1116_v61 = vmul.f32 %v1921_v46, %v1108_v25 }
 0x453   :  { %1737 = vmatpush3.msra.mxu0 %v1116_v61 }
 0x454   :  { %v1923_v52 = vpop.eup %1922  ;;  %1739 = vmatmul.mubr.msk.f32.vlgmr.msra.gmra.mrb[14].mxu0 %vm1118_vm9, %v1117_v47 }
 0x455   :  { %v735_v31 = vmul.f32 %v1923_v52, %v2755_v42 }
 0x457   :  { %1554 = vmatprep.mubr.f32.mxu1 %v735_v31 }
 0x458   :  { %1555 = vmatmul.mubr.f32.vlgmr.msra.gmra.mrb[10].mxu1 %v735_v31 }
 0x527   :  { %v1188_v53 = vpop.f32.mrb[14].mxu0 }
 0x528   :  { %1370 = vst [vmem:[%s1369_s25] sm:$0xff] %v1188_v53  ;;  %v1192_v35 = vmul.f32 %v1188_v53, %v735_v31  ;;  %v1740_v59 = vpop.f32.mrb[15].mxu0 }
 0x52a   :  { %1193 = vadd.xlane.f32.xlu1 %v1192_v35 }
 0x52b   :  { %v1294_v11 = vpop.f32.mrb[10].mxu1 }
 0x52c   :  { %v1299_v12 = vmul.f32 14.285714, %v1294_v11  ;;  %v1296_v13 = vpop.f32.mrb[11].mxu1 }
 0x52d   :  { %v1300_v2 = vmul.f32 14.285714, %v1296_v13 }
 0x52e   :  { %1302 = vst [vmem:[%s2998_s18 + $0x8] sm:$0xff] %v1299_v12 }
 0x52f   :  { %1303 = vst [vmem:[%s2998_s18 + $0x10] sm:$0xff] %v1300_v2 }
 0x5b7   :  { %v1194_v42 = vpop.xlane.xlu1 %1193 }
 0x5b8   :  { %v1195_v15 = vmul.f32 14.285714, %v1194_v42 }
 0x5ba   :  { %1301 = vst [vmem:[%s2998_s18] sm:$0xff] %v1195_v15 }

</bundles_post_ra>
